<compile_context>
chip_gen: v7x
topology: tpu7x:2x2x1
jax: 0.10.0
libtpu: 0.0.40
codegen_flags: <defaults>
</compile_context>

<pallas_src>
import functools

import jax
import jax.numpy as jnp
from jax.experimental import pallas as pl
from jax.experimental.pallas import tpu as pltpu


def _pick_block(n, cap, mult=1):
    """Largest block <= cap that divides n and is a multiple of `mult`; falls
    back to the full dimension (always a legal block) if none exists."""
    if n <= cap:
        return n
    for d in range(min(cap, n), 0, -1):
        if n % d == 0 and d % mult == 0:
            return d
    return n


# ----------------------------------------------------------------------------
# Generic tiled (N, K) @ (K, O) + b kernel.
# Used for (a) the hoisted LSTM input projection over all timesteps at once and
# (b) the final Linear head.  Rows and output columns are both "parallel".
# ----------------------------------------------------------------------------
def _matmul_bias_kernel(x_ref, w_ref, b_ref, o_ref):
    acc = jnp.dot(x_ref[...], w_ref[...], preferred_element_type=jnp.float32)
    o_ref[...] = (acc + b_ref[...]).astype(o_ref.dtype)


def matmul_bias(x2d, w_t, bias, *, out_dtype, row_cap=256, col_cap=512):
    """x2d: (N, K), w_t: (K, O), bias: (O,) -> (N, O) in out_dtype."""
    N, K = x2d.shape
    O = w_t.shape[1]
    n_blk = _pick_block(N, row_cap, mult=8)
    o_blk = _pick_block(O, col_cap, mult=128)
    n_i, n_j = N // n_blk, O // o_blk

    if n_j == 1:
        # Grid-invariant weight/bias: single VMEM buffer (no double-buffering).
        w_spec = pl.BlockSpec((K, o_blk), lambda i, j: (0, 0),
                              pipeline_mode=pl.Buffered(1))
        b_spec = pl.BlockSpec((1, o_blk), lambda i, j: (0, 0),
                              pipeline_mode=pl.Buffered(1))
    else:
        w_spec = pl.BlockSpec((K, o_blk), lambda i, j: (0, j))
        b_spec = pl.BlockSpec((1, o_blk), lambda i, j: (0, j))

    return pl.pallas_call(
        _matmul_bias_kernel,
        out_shape=jax.ShapeDtypeStruct((N, O), out_dtype),
        grid_spec=pltpu.PrefetchScalarGridSpec(
            num_scalar_prefetch=0,
            grid=(n_i, n_j),
            in_specs=[
                pl.BlockSpec((n_blk, K), lambda i, j: (i, 0)),
                w_spec,
                b_spec,
            ],
            out_specs=pl.BlockSpec((n_blk, o_blk), lambda i, j: (i, j)),
        ),
        compiler_params=pltpu.CompilerParams(
            dimension_semantics=("parallel", "parallel"),
            vmem_limit_bytes=48 * 1024 * 1024),
    )(x2d, w_t, bias.reshape(1, O))


# ----------------------------------------------------------------------------
# Recurrent LSTM kernel, time-major.
# grid = (batch blocks [parallel], time blocks [arbitrary]).
# Consumes the precomputed bf16 input-projection gates (gates_x) and only does
# the h_prev @ W_hh^T matmul on the sequential critical path.
# ----------------------------------------------------------------------------
def _lstm_recurrent_kernel(gx_ref, whh_ref, h0_ref, c0_ref, out_ref,
                           h_sc, c_sc, *, hidden_dim, t_block):
    t_idx = pl.program_id(1)

    @pl.when(t_idx == 0)
    def _():
        h_sc[...] = h0_ref[...].astype(jnp.float32)
        c_sc[...] = c0_ref[...].astype(jnp.float32)

    whh = whh_ref[...]                       # (H, 4H) bf16, resident (Buffered(1))
    H = hidden_dim

    def step(tt, carry):
        h_prev, c_prev = carry               # (b_blk, H) f32
        # Dense (b_blk, 4H) slab read per timestep (time-major layout).
        gates = gx_ref[tt].astype(jnp.float32) + jnp.dot(
            h_prev.astype(whh.dtype), whh, preferred_element_type=jnp.float32)

        # NOTE: for production H (multiple of 128) these per-gate slices are
        # lane-aligned vreg views; for other H consider padding H to 128.
        i_g = jax.nn.sigmoid(gates[:, 0 * H:1 * H])
        f_g = jax.nn.sigmoid(gates[:, 1 * H:2 * H])
        g_g = jnp.tanh(gates[:, 2 * H:3 * H])
        o_g = jax.nn.sigmoid(gates[:, 3 * H:4 * H])

        c_new = f_g * c_prev + i_g * g_g
        h_new = o_g * jnp.tanh(c_new)
        out_ref[tt] = h_new.astype(out_ref.dtype)   # dense (b_blk, H) store
        return h_new, c_new

    h_fin, c_fin = jax.lax.fori_loop(
        0, t_block, step, (h_sc[...], c_sc[...]), unroll=True)
    h_sc[...] = h_fin
    c_sc[...] = c_fin


def _recurrent_blocks(b_pad, seq, hidden, budget=28 * 1024 * 1024):
    """Pick (b_blk, t_blk) so the recurrent kernel's VMEM footprint fits a
    conservative budget (sized for v7x's 64 MiB physical VMEM)."""
    G = 4 * hidden
    b_blk = _pick_block(b_pad, 256, mult=8)   # fill the 256-wide MXU when possible
    t_blk = _pick_block(seq, 8)

    def vmem_bytes(b, t):
        gx = 2 * t * b * G * 2          # bf16 gates_x block, double-buffered
        out = 2 * t * b * hidden * 2    # bf16 out block, double-buffered
        whh = hidden * G * 2            # bf16 W_hh^T, single buffer
        hc0 = 2 * 2 * b * hidden * 4    # f32 h0 + c0, double-buffered
        scr = 2 * b * hidden * 4        # f32 h/c scratch
        return gx + out + whh + hc0 + scr

    while vmem_bytes(b_blk, t_blk) > budget and t_blk > 1:
        t_blk = _pick_block(seq, t_blk - 1)
    while vmem_bytes(b_blk, t_blk) > budget and b_blk > 8:
        b_blk = _pick_block(b_pad, b_blk - 1, mult=8)
    return b_blk, t_blk


def lstm_layer_tm(x_tm, w_ih, w_hh, bias, h0, c0, *, compute_dtype=jnp.bfloat16):
    """One LSTM layer, time-major.

    x_tm: (S, B, D_in)   w_ih: (4H, D_in)   w_hh: (4H, H)   bias: (4H,)
    h0, c0: (B, H)       returns the h sequence (S, B, H) in compute_dtype.
    """
    S, B, D = x_tm.shape
    H = w_hh.shape[1]
    G = 4 * H

    # ---- Hoisted input projection: one big pipelined MXU matmul, bf16 output --
    gates_x = matmul_bias(
        x_tm.reshape(S * B, D).astype(compute_dtype),
        jnp.transpose(w_ih).astype(compute_dtype),        # (D, 4H)
        bias, out_dtype=compute_dtype).reshape(S, B, G)

    whh_t = jnp.transpose(w_hh).astype(compute_dtype)     # (H, 4H)

    b_blk, t_blk = _recurrent_blocks(B, S, H)
    nb, nt = B // b_blk, S // t_blk

    kernel = functools.partial(_lstm_recurrent_kernel,
                               hidden_dim=H, t_block=t_blk)

    return pl.pallas_call(
        kernel,
        out_shape=jax.ShapeDtypeStruct((S, B, H), compute_dtype),
        grid_spec=pltpu.PrefetchScalarGridSpec(
            num_scalar_prefetch=0,
            grid=(nb, nt),
            in_specs=[
                # time-major gates: dense (b_blk, 4H) slab per timestep
                pl.BlockSpec((t_blk, b_blk, G), lambda b, t: (t, b, 0)),
                # grid-invariant recurrent weights: single VMEM buffer
                pl.BlockSpec((H, G), lambda b, t: (0, 0),
                             pipeline_mode=pl.Buffered(1)),
                pl.BlockSpec((b_blk, H), lambda b, t: (b, 0)),   # h0
                pl.BlockSpec((b_blk, H), lambda b, t: (b, 0)),   # c0
            ],
            out_specs=pl.BlockSpec((t_blk, b_blk, H), lambda b, t: (t, b, 0)),
            scratch_shapes=[
                pltpu.VMEM((b_blk, H), jnp.float32),   # h state (carried over t)
                pltpu.VMEM((b_blk, H), jnp.float32),   # c state (carried over t)
            ],
        ),
        compiler_params=pltpu.CompilerParams(
            dimension_semantics=("parallel", "arbitrary"),
            vmem_limit_bytes=48 * 1024 * 1024),
    )(gates_x, whh_t, h0, c0)


# ----------------------------------------------------------------------------
# Full model: stacked LSTM + Linear head (matches the PyTorch module's forward)
# ----------------------------------------------------------------------------
def lstm_model_forward(params, x, h0, c0, *, compute_dtype=jnp.bfloat16):
    """x: (B, S, input_dim), h0/c0: (num_layers, B, H) -> (B, S, output_dim)."""
    B, S, _ = x.shape

    # Pad batch to a multiple of 8 (sublane-dense state/gate tiles).
    B_pad = ((B + 7) // 8) * 8
    pad_b = B_pad - B

    # Internal time-major layout; single transpose in, single transpose out.
    x_tm = jnp.transpose(x, (1, 0, 2))                      # (S, B, D)
    if pad_b:
        x_tm = jnp.pad(x_tm, ((0, 0), (0, pad_b), (0, 0)))
        h0 = jnp.pad(h0, ((0, 0), (0, pad_b), (0, 0)))
        c0 = jnp.pad(c0, ((0, 0), (0, pad_b), (0, 0)))

    h = x_tm
    for layer_idx, lp in enumerate(params["lstm"]):
        h = lstm_layer_tm(h, lp["w_ih"], lp["w_hh"], lp["bias"],
                          h0[layer_idx], c0[layer_idx],
                          compute_dtype=compute_dtype)

    # ---- FC head (lane-dense: pad output dim up to a multiple of 128) --------
    Hd = h.shape[-1]
    O = params["fc_w"].shape[0]
    O_pad = O if O % 128 == 0 else ((O + 127) // 128) * 128
    fc_w, fc_b = params["fc_w"], params["fc_b"]
    if O_pad != O:
        fc_w = jnp.pad(fc_w, ((0, O_pad - O), (0, 0)))
        fc_b = jnp.pad(fc_b, ((0, O_pad - O),))

    y = matmul_bias(
        h.reshape(S * B_pad, Hd),
        jnp.transpose(fc_w).astype(compute_dtype),
        fc_b, out_dtype=jnp.float32)
    y = y.reshape(S, B_pad, O_pad)[:, :B, :O]               # drop padding
    return jnp.transpose(y, (1, 0, 2))                       # back to (B, S, O)


def init_params(key, input_dim, hidden_dim, output_dim, num_layers):
    xavier = jax.nn.initializers.glorot_uniform()
    ortho = jax.nn.initializers.orthogonal()
    lstm_params = []
    for layer in range(num_layers):
        d_in = input_dim if layer == 0 else hidden_dim
        key, k1, k2 = jax.random.split(key, 3)
        lstm_params.append({
            "w_ih": xavier(k1, (4 * hidden_dim, d_in), jnp.float32),
            "w_hh": ortho(k2, (4 * hidden_dim, hidden_dim), jnp.float32),
            "bias": jnp.zeros((4 * hidden_dim,), jnp.float32),  # b_ih + b_hh = 0
        })
    key, kf = jax.random.split(key)
    return {
        "lstm": lstm_params,
        "fc_w": xavier(kf, (output_dim, hidden_dim), jnp.float32),
        "fc_b": jnp.zeros((output_dim,), jnp.float32),
    }


if __name__ == "__main__":
    # Small shapes consistent with the module's forward signature.
    B, S = 2, 8
    input_dim, hidden_dim, output_dim, num_layers = 16, 32, 8, 2

    key = jax.random.PRNGKey(0)
    kx, kh, kc, kp = jax.random.split(key, 4)

    x = jax.random.normal(kx, (B, S, input_dim), jnp.float32)
    h0 = jax.random.normal(kh, (num_layers, B, hidden_dim), jnp.float32)
    c0 = jax.random.normal(kc, (num_layers, B, hidden_dim), jnp.float32)
    params = init_params(kp, input_dim, hidden_dim, output_dim, num_layers)

    fwd = jax.jit(lstm_model_forward)
    out = fwd(params, x, h0, c0)
    jax.block_until_ready(out)
    assert out.shape == (B, S, output_dim)
    assert bool(jnp.all(jnp.isfinite(out)))
    print("KERNEL_OK")
</pallas_src>

<mosaic_0001>
module attributes {stable_mosaic.version = 11 : i64} {
  func.func @_matmul_bias_kernel(%arg0: i32, %arg1: i32, %arg2: memref<64x16xbf16, #tpu.memory_space<vmem>>, %arg3: memref<16x128xbf16, #tpu.memory_space<vmem>>, %arg4: memref<1x128xf32, #tpu.memory_space<vmem>>, %arg5: memref<64x128xbf16, #tpu.memory_space<vmem>>) attributes {dimension_semantics = [#tpu.dimension_semantics<parallel>, #tpu.dimension_semantics<parallel>], iteration_bounds = array<i64: 1, 1>, scalar_prefetch = 0 : i64, scratch_operands = 0 : i64, tpu.core_type = #tpu.core_type<tc>, window_params = [{transform_indices = @transform_0, window_bounds = array<i64: 64, 16>}, {pipeline_mode = #tpu.pipeline_mode<synchronous>, transform_indices = @transform_1, window_bounds = array<i64: 16, 128>}, {pipeline_mode = #tpu.pipeline_mode<synchronous>, transform_indices = @transform_2, window_bounds = array<i64: 1, 128>}, {transform_indices = @transform_3, window_bounds = array<i64: 64, 128>}]} {
    %c0 = arith.constant 0 : index
    %c0_0 = arith.constant 0 : index
    %0 = vector.load %arg2[%c0, %c0_0] : memref<64x16xbf16, #tpu.memory_space<vmem>>, vector<64x16xbf16>
    %c0_1 = arith.constant 0 : index
    %c0_2 = arith.constant 0 : index
    %1 = vector.load %arg3[%c0_1, %c0_2] : memref<16x128xbf16, #tpu.memory_space<vmem>>, vector<16x128xbf16>
    %cst = arith.constant dense<0.000000e+00> : vector<64x128xf32>
    %2 = tpu.matmul %0, %1, %cst {dimension_numbers = #tpu.dot_dimension_numbers<[1], [0], [0], [1], [0, 0, 1, 1], [], []>} : vector<64x16xbf16>, vector<16x128xbf16>, vector<64x128xf32> -> vector<64x128xf32>
    %c0_3 = arith.constant 0 : index
    %c0_4 = arith.constant 0 : index
    %3 = vector.load %arg4[%c0_3, %c0_4] : memref<1x128xf32, #tpu.memory_space<vmem>>, vector<1x128xf32>
    %4 = vector.broadcast %3 : vector<1x128xf32> to vector<64x128xf32>
    %5 = arith.addf %2, %4 : vector<64x128xf32>
    %6 = arith.truncf %5 : vector<64x128xf32> to vector<64x128xbf16>
    %c0_5 = arith.constant 0 : index
    %c0_6 = arith.constant 0 : index
    %7 = vector.load %arg5[%c0_5, %c0_6] : memref<64x128xbf16, #tpu.memory_space<vmem>>, vector<64x128xbf16>
    tpu.vector_store %arg5[%c0_5, %c0_6], %6 {strides = array<i32>} : memref<64x128xbf16, #tpu.memory_space<vmem>>, vector<64x128xbf16>,
    return
  }
  func.func @transform_0(%arg0: i32, %arg1: i32) -> (i32, i32) {
    %c0_i32 = arith.constant 0 : i32
    %c0_i32_0 = arith.constant 0 : i32
    return %arg0, %c0_i32 : i32, i32
  }
  func.func @transform_1(%arg0: i32, %arg1: i32) -> (i32, i32) {
    %c0_i32 = arith.constant 0 : i32
    %c0_i32_0 = arith.constant 0 : i32
    %c0_i32_1 = arith.constant 0 : i32
    return %c0_i32, %c0_i32_0 : i32, i32
  }
  func.func @transform_2(%arg0: i32, %arg1: i32) -> (i32, i32) {
    %c0_i32 = arith.constant 0 : i32
    %c0_i32_0 = arith.constant 0 : i32
    %c0_i32_1 = arith.constant 0 : i32
    return %c0_i32, %c0_i32_0 : i32, i32
  }
  func.func @transform_3(%arg0: i32, %arg1: i32) -> (i32, i32) {
    %c0_i32 = arith.constant 0 : i32
    return %arg0, %arg1 : i32, i32
  }
}

module attributes {stable_mosaic.version = 11 : i64} {
  func.func @_matmul_bias_kernel(%arg0: i32, %arg1: i32, %arg2: memref<64x32xbf16, #tpu.memory_space<vmem>>, %arg3: memref<32x128xbf16, #tpu.memory_space<vmem>>, %arg4: memref<1x128xf32, #tpu.memory_space<vmem>>, %arg5: memref<64x128xbf16, #tpu.memory_space<vmem>>) attributes {dimension_semantics = [#tpu.dimension_semantics<parallel>, #tpu.dimension_semantics<parallel>], iteration_bounds = array<i64: 1, 1>, scalar_prefetch = 0 : i64, scratch_operands = 0 : i64, tpu.core_type = #tpu.core_type<tc>, window_params = [{transform_indices = @transform_0, window_bounds = array<i64: 64, 32>}, {pipeline_mode = #tpu.pipeline_mode<synchronous>, transform_indices = @transform_1, window_bounds = array<i64: 32, 128>}, {pipeline_mode = #tpu.pipeline_mode<synchronous>, transform_indices = @transform_2, window_bounds = array<i64: 1, 128>}, {transform_indices = @transform_3, window_bounds = array<i64: 64, 128>}]} {
    %c0 = arith.constant 0 : index
    %c0_0 = arith.constant 0 : index
    %0 = vector.load %arg2[%c0, %c0_0] : memref<64x32xbf16, #tpu.memory_space<vmem>>, vector<64x32xbf16>
    %c0_1 = arith.constant 0 : index
    %c0_2 = arith.constant 0 : index
    %1 = vector.load %arg3[%c0_1, %c0_2] : memref<32x128xbf16, #tpu.memory_space<vmem>>, vector<32x128xbf16>
    %cst = arith.constant dense<0.000000e+00> : vector<64x128xf32>
    %2 = tpu.matmul %0, %1, %cst {dimension_numbers = #tpu.dot_dimension_numbers<[1], [0], [0], [1], [0, 0, 1, 1], [], []>} : vector<64x32xbf16>, vector<32x128xbf16>, vector<64x128xf32> -> vector<64x128xf32>
    %c0_3 = arith.constant 0 : index
    %c0_4 = arith.constant 0 : index
    %3 = vector.load %arg4[%c0_3, %c0_4] : memref<1x128xf32, #tpu.memory_space<vmem>>, vector<1x128xf32>
    %4 = vector.broadcast %3 : vector<1x128xf32> to vector<64x128xf32>
    %5 = arith.addf %2, %4 : vector<64x128xf32>
    %6 = arith.truncf %5 : vector<64x128xf32> to vector<64x128xbf16>
    %c0_5 = arith.constant 0 : index
    %c0_6 = arith.constant 0 : index
    %7 = vector.load %arg5[%c0_5, %c0_6] : memref<64x128xbf16, #tpu.memory_space<vmem>>, vector<64x128xbf16>
    tpu.vector_store %arg5[%c0_5, %c0_6], %6 {strides = array<i32>} : memref<64x128xbf16, #tpu.memory_space<vmem>>, vector<64x128xbf16>,
    return
  }
  func.func @transform_0(%arg0: i32, %arg1: i32) -> (i32, i32) {
    %c0_i32 = arith.constant 0 : i32
    %c0_i32_0 = arith.constant 0 : i32
    return %arg0, %c0_i32 : i32, i32
  }
  func.func @transform_1(%arg0: i32, %arg1: i32) -> (i32, i32) {
    %c0_i32 = arith.constant 0 : i32
    %c0_i32_0 = arith.constant 0 : i32
    %c0_i32_1 = arith.constant 0 : i32
    return %c0_i32, %c0_i32_0 : i32, i32
  }
  func.func @transform_2(%arg0: i32, %arg1: i32) -> (i32, i32) {
    %c0_i32 = arith.constant 0 : i32
    %c0_i32_0 = arith.constant 0 : i32
    %c0_i32_1 = arith.constant 0 : i32
    return %c0_i32, %c0_i32_0 : i32, i32
  }
  func.func @transform_3(%arg0: i32, %arg1: i32) -> (i32, i32) {
    %c0_i32 = arith.constant 0 : i32
    return %arg0, %arg1 : i32, i32
  }
}

module attributes {stable_mosaic.version = 11 : i64} {
  func.func @_lstm_recurrent_kernel(%arg0: i32, %arg1: i32, %arg2: memref<8x8x128xbf16, #tpu.memory_space<vmem>>, %arg3: memref<32x128xbf16, #tpu.memory_space<vmem>>, %arg4: memref<8x32xf32, #tpu.memory_space<vmem>>, %arg5: memref<8x32xf32, #tpu.memory_space<vmem>>, %arg6: memref<8x8x32xbf16, #tpu.memory_space<vmem>>, %arg7: memref<8x32xf32, #tpu.memory_space<vmem>>, %arg8: memref<8x32xf32, #tpu.memory_space<vmem>>) attributes {dimension_semantics = [#tpu.dimension_semantics<parallel>, #tpu.dimension_semantics<arbitrary>], iteration_bounds = array<i64: 1, 1>, scalar_prefetch = 0 : i64, scratch_operands = 2 : i64, tpu.core_type = #tpu.core_type<tc>, window_params = [{transform_indices = @transform_0, window_bounds = array<i64: 8, 8, 128>}, {pipeline_mode = #tpu.pipeline_mode<synchronous>, transform_indices = @transform_1, window_bounds = array<i64: 32, 128>}, {transform_indices = @transform_2, window_bounds = array<i64: 8, 32>}, {transform_indices = @transform_3, window_bounds = array<i64: 8, 32>}, {transform_indices = @transform_4, window_bounds = array<i64: 8, 8, 32>}]} {
    %c0_i32 = arith.constant 0 : i32
    %0 = arith.cmpi eq, %arg1, %c0_i32 : i32
    %1 = arith.extui %0 : i1 to i32
    %c0_i32_0 = arith.constant 0 : i32
    %2 = arith.cmpi ne, %1, %c0_i32_0 : i32
    scf.if %2 {
      %c0_74 = arith.constant 0 : index
      %c0_75 = arith.constant 0 : index
      %304 = vector.load %arg4[%c0_74, %c0_75] : memref<8x32xf32, #tpu.memory_space<vmem>>, vector<8x32xf32>
      %c0_76 = arith.constant 0 : index
      %c0_77 = arith.constant 0 : index
      %305 = vector.load %arg7[%c0_76, %c0_77] : memref<8x32xf32, #tpu.memory_space<vmem>>, vector<8x32xf32>
      tpu.vector_store %arg7[%c0_76, %c0_77], %304 {strides = array<i32>} : memref<8x32xf32, #tpu.memory_space<vmem>>, vector<8x32xf32>,
      %c0_78 = arith.constant 0 : index
      %c0_79 = arith.constant 0 : index
      %306 = vector.load %arg5[%c0_78, %c0_79] : memref<8x32xf32, #tpu.memory_space<vmem>>, vector<8x32xf32>
      %c0_80 = arith.constant 0 : index
      %c0_81 = arith.constant 0 : index
      %307 = vector.load %arg8[%c0_80, %c0_81] : memref<8x32xf32, #tpu.memory_space<vmem>>, vector<8x32xf32>
      tpu.vector_store %arg8[%c0_80, %c0_81], %306 {strides = array<i32>} : memref<8x32xf32, #tpu.memory_space<vmem>>, vector<8x32xf32>,
    } else {
    }
    %c0 = arith.constant 0 : index
    %c0_1 = arith.constant 0 : index
    %3 = vector.load %arg3[%c0, %c0_1] : memref<32x128xbf16, #tpu.memory_space<vmem>>, vector<32x128xbf16>
    %c0_2 = arith.constant 0 : index
    %c0_3 = arith.constant 0 : index
    %4 = vector.load %arg7[%c0_2, %c0_3] : memref<8x32xf32, #tpu.memory_space<vmem>>, vector<8x32xf32>
    %c0_4 = arith.constant 0 : index
    %c0_5 = arith.constant 0 : index
    %5 = vector.load %arg8[%c0_4, %c0_5] : memref<8x32xf32, #tpu.memory_space<vmem>>, vector<8x32xf32>
    %c0_i32_6 = arith.constant 0 : i32
    %6 = arith.index_cast %c0_i32_6 : i32 to index
    %c0_7 = arith.constant 0 : index
    %c0_8 = arith.constant 0 : index
    %7 = vector.load %arg2[%6, %c0_7, %c0_8] : memref<8x8x128xbf16, #tpu.memory_space<vmem>>, vector<1x8x128xbf16>
    %8 = vector.shape_cast %7 : vector<1x8x128xbf16> to vector<8x128xbf16>
    %9 = arith.extf %8 : vector<8x128xbf16> to vector<8x128xf32>
    %10 = arith.truncf %4 : vector<8x32xf32> to vector<8x32xbf16>
    %cst = arith.constant dense<0.000000e+00> : vector<8x128xf32>
    %11 = tpu.matmul %10, %3, %cst {dimension_numbers = #tpu.dot_dimension_numbers<[1], [0], [0], [1], [0, 0, 1, 1], [], []>} : vector<8x32xbf16>, vector<32x128xbf16>, vector<8x128xf32> -> vector<8x128xf32>
    %12 = arith.addf %9, %11 : vector<8x128xf32>
    %13 = vector.extract_strided_slice %12 {offsets = [0, 0], sizes = [8, 32], strides = [1, 1]} : vector<8x128xf32> to vector<8x32xf32>
    %14 = arith.negf %13 : vector<8x32xf32>
    %15 = math.exp %14 : vector<8x32xf32>
    %cst_9 = arith.constant 1.000000e+00 : f32
    %16 = vector.broadcast %cst_9 : f32 to vector<8x32xf32>
    %17 = arith.addf %16, %15 : vector<8x32xf32>
    %18 = arith.divf %16, %17 : vector<8x32xf32>
    %19 = vector.extract_strided_slice %12 {offsets = [0, 32], sizes = [8, 32], strides = [1, 1]} : vector<8x128xf32> to vector<8x32xf32>
    %20 = arith.negf %19 : vector<8x32xf32>
    %21 = math.exp %20 : vector<8x32xf32>
    %cst_10 = arith.constant 1.000000e+00 : f32
    %22 = vector.broadcast %cst_10 : f32 to vector<8x32xf32>
    %23 = arith.addf %22, %21 : vector<8x32xf32>
    %24 = arith.divf %22, %23 : vector<8x32xf32>
    %25 = vector.extract_strided_slice %12 {offsets = [0, 64], sizes = [8, 32], strides = [1, 1]} : vector<8x128xf32> to vector<8x32xf32>
    %26 = math.tanh %25 : vector<8x32xf32>
    %27 = vector.extract_strided_slice %12 {offsets = [0, 96], sizes = [8, 32], strides = [1, 1]} : vector<8x128xf32> to vector<8x32xf32>
    %28 = arith.negf %27 : vector<8x32xf32>
    %29 = math.exp %28 : vector<8x32xf32>
    %cst_11 = arith.constant 1.000000e+00 : f32
    %30 = vector.broadcast %cst_11 : f32 to vector<8x32xf32>
    %31 = arith.addf %30, %29 : vector<8x32xf32>
    %32 = arith.divf %30, %31 : vector<8x32xf32>
    %33 = arith.mulf %24, %5 : vector<8x32xf32>
    %34 = arith.mulf %18, %26 : vector<8x32xf32>
    %35 = arith.addf %33, %34 : vector<8x32xf32>
    %36 = math.tanh %35 : vector<8x32xf32>
    %37 = arith.mulf %32, %36 : vector<8x32xf32>
    %38 = arith.truncf %37 : vector<8x32xf32> to vector<8x32xbf16>
    %39 = arith.index_cast %c0_i32_6 : i32 to index
    %c0_12 = arith.constant 0 : index
    %c0_13 = arith.constant 0 : index
    %40 = vector.load %arg6[%39, %c0_12, %c0_13] : memref<8x8x32xbf16, #tpu.memory_space<vmem>>, vector<1x8x32xbf16>
    %41 = vector.shape_cast %40 : vector<1x8x32xbf16> to vector<8x32xbf16>
    %42 = vector.shape_cast %38 : vector<8x32xbf16> to vector<1x8x32xbf16>
    tpu.vector_store %arg6[%39, %c0_12, %c0_13], %42 {strides = array<i32>} : memref<8x8x32xbf16, #tpu.memory_space<vmem>>, vector<1x8x32xbf16>,
    %c1_i32 = arith.constant 1 : i32
    %43 = arith.index_cast %c1_i32 : i32 to index
    %c0_14 = arith.constant 0 : index
    %c0_15 = arith.constant 0 : index
    %44 = vector.load %arg2[%43, %c0_14, %c0_15] : memref<8x8x128xbf16, #tpu.memory_space<vmem>>, vector<1x8x128xbf16>
    %45 = vector.shape_cast %44 : vector<1x8x128xbf16> to vector<8x128xbf16>
    %46 = arith.extf %45 : vector<8x128xbf16> to vector<8x128xf32>
    %47 = arith.truncf %37 : vector<8x32xf32> to vector<8x32xbf16>
    %cst_16 = arith.constant dense<0.000000e+00> : vector<8x128xf32>
    %48 = tpu.matmul %47, %3, %cst_16 {dimension_numbers = #tpu.dot_dimension_numbers<[1], [0], [0], [1], [0, 0, 1, 1], [], []>} : vector<8x32xbf16>, vector<32x128xbf16>, vector<8x128xf32> -> vector<8x128xf32>
    %49 = arith.addf %46, %48 : vector<8x128xf32>
    %50 = vector.extract_strided_slice %49 {offsets = [0, 0], sizes = [8, 32], strides = [1, 1]} : vector<8x128xf32> to vector<8x32xf32>
    %51 = arith.negf %50 : vector<8x32xf32>
    %52 = math.exp %51 : vector<8x32xf32>
    %cst_17 = arith.constant 1.000000e+00 : f32
    %53 = vector.broadcast %cst_17 : f32 to vector<8x32xf32>
    %54 = arith.addf %53, %52 : vector<8x32xf32>
    %55 = arith.divf %53, %54 : vector<8x32xf32>
    %56 = vector.extract_strided_slice %49 {offsets = [0, 32], sizes = [8, 32], strides = [1, 1]} : vector<8x128xf32> to vector<8x32xf32>
    %57 = arith.negf %56 : vector<8x32xf32>
    %58 = math.exp %57 : vector<8x32xf32>
    %cst_18 = arith.constant 1.000000e+00 : f32
    %59 = vector.broadcast %cst_18 : f32 to vector<8x32xf32>
    %60 = arith.addf %59, %58 : vector<8x32xf32>
    %61 = arith.divf %59, %60 : vector<8x32xf32>
    %62 = vector.extract_strided_slice %49 {offsets = [0, 64], sizes = [8, 32], strides = [1, 1]} : vector<8x128xf32> to vector<8x32xf32>
    %63 = math.tanh %62 : vector<8x32xf32>
    %64 = vector.extract_strided_slice %49 {offsets = [0, 96], sizes = [8, 32], strides = [1, 1]} : vector<8x128xf32> to vector<8x32xf32>
    %65 = arith.negf %64 : vector<8x32xf32>
    %66 = math.exp %65 : vector<8x32xf32>
    %cst_19 = arith.constant 1.000000e+00 : f32
    %67 = vector.broadcast %cst_19 : f32 to vector<8x32xf32>
    %68 = arith.addf %67, %66 : vector<8x32xf32>
    %69 = arith.divf %67, %68 : vector<8x32xf32>
    %70 = arith.mulf %61, %35 : vector<8x32xf32>
    %71 = arith.mulf %55, %63 : vector<8x32xf32>
    %72 = arith.addf %70, %71 : vector<8x32xf32>
    %73 = math.tanh %72 : vector<8x32xf32>
    %74 = arith.mulf %69, %73 : vector<8x32xf32>
    %75 = arith.truncf %74 : vector<8x32xf32> to vector<8x32xbf16>
    %76 = arith.index_cast %c1_i32 : i32 to index
    %c0_20 = arith.constant 0 : index
    %c0_21 = arith.constant 0 : index
    %77 = vector.load %arg6[%76, %c0_20, %c0_21] : memref<8x8x32xbf16, #tpu.memory_space<vmem>>, vector<1x8x32xbf16>
    %78 = vector.shape_cast %77 : vector<1x8x32xbf16> to vector<8x32xbf16>
    %79 = vector.shape_cast %75 : vector<8x32xbf16> to vector<1x8x32xbf16>
    tpu.vector_store %arg6[%76, %c0_20, %c0_21], %79 {strides = array<i32>} : memref<8x8x32xbf16, #tpu.memory_space<vmem>>, vector<1x8x32xbf16>,
    %c2_i32 = arith.constant 2 : i32
    %80 = arith.index_cast %c2_i32 : i32 to index
    %c0_22 = arith.constant 0 : index
    %c0_23 = arith.constant 0 : index
    %81 = vector.load %arg2[%80, %c0_22, %c0_23] : memref<8x8x128xbf16, #tpu.memory_space<vmem>>, vector<1x8x128xbf16>
    %82 = vector.shape_cast %81 : vector<1x8x128xbf16> to vector<8x128xbf16>
    %83 = arith.extf %82 : vector<8x128xbf16> to vector<8x128xf32>
    %84 = arith.truncf %74 : vector<8x32xf32> to vector<8x32xbf16>
    %cst_24 = arith.constant dense<0.000000e+00> : vector<8x128xf32>
    %85 = tpu.matmul %84, %3, %cst_24 {dimension_numbers = #tpu.dot_dimension_numbers<[1], [0], [0], [1], [0, 0, 1, 1], [], []>} : vector<8x32xbf16>, vector<32x128xbf16>, vector<8x128xf32> -> vector<8x128xf32>
    %86 = arith.addf %83, %85 : vector<8x128xf32>
    %87 = vector.extract_strided_slice %86 {offsets = [0, 0], sizes = [8, 32], strides = [1, 1]} : vector<8x128xf32> to vector<8x32xf32>
    %88 = arith.negf %87 : vector<8x32xf32>
    %89 = math.exp %88 : vector<8x32xf32>
    %cst_25 = arith.constant 1.000000e+00 : f32
    %90 = vector.broadcast %cst_25 : f32 to vector<8x32xf32>
    %91 = arith.addf %90, %89 : vector<8x32xf32>
    %92 = arith.divf %90, %91 : vector<8x32xf32>
    %93 = vector.extract_strided_slice %86 {offsets = [0, 32], sizes = [8, 32], strides = [1, 1]} : vector<8x128xf32> to vector<8x32xf32>
    %94 = arith.negf %93 : vector<8x32xf32>
    %95 = math.exp %94 : vector<8x32xf32>
    %cst_26 = arith.constant 1.000000e+00 : f32
    %96 = vector.broadcast %cst_26 : f32 to vector<8x32xf32>
    %97 = arith.addf %96, %95 : vector<8x32xf32>
    %98 = arith.divf %96, %97 : vector<8x32xf32>
    %99 = vector.extract_strided_slice %86 {offsets = [0, 64], sizes = [8, 32], strides = [1, 1]} : vector<8x128xf32> to vector<8x32xf32>
    %100 = math.tanh %99 : vector<8x32xf32>
    %101 = vector.extract_strided_slice %86 {offsets = [0, 96], sizes = [8, 32], strides = [1, 1]} : vector<8x128xf32> to vector<8x32xf32>
    %102 = arith.negf %101 : vector<8x32xf32>
    %103 = math.exp %102 : vector<8x32xf32>
    %cst_27 = arith.constant 1.000000e+00 : f32
    %104 = vector.broadcast %cst_27 : f32 to vector<8x32xf32>
    %105 = arith.addf %104, %103 : vector<8x32xf32>
    %106 = arith.divf %104, %105 : vector<8x32xf32>
    %107 = arith.mulf %98, %72 : vector<8x32xf32>
    %108 = arith.mulf %92, %100 : vector<8x32xf32>
    %109 = arith.addf %107, %108 : vector<8x32xf32>
    %110 = math.tanh %109 : vector<8x32xf32>
    %111 = arith.mulf %106, %110 : vector<8x32xf32>
    %112 = arith.truncf %111 : vector<8x32xf32> to vector<8x32xbf16>
    %113 = arith.index_cast %c2_i32 : i32 to index
    %c0_28 = arith.constant 0 : index
    %c0_29 = arith.constant 0 : index
    %114 = vector.load %arg6[%113, %c0_28, %c0_29] : memref<8x8x32xbf16, #tpu.memory_space<vmem>>, vector<1x8x32xbf16>
    %115 = vector.shape_cast %114 : vector<1x8x32xbf16> to vector<8x32xbf16>
    %116 = vector.shape_cast %112 : vector<8x32xbf16> to vector<1x8x32xbf16>
    tpu.vector_store %arg6[%113, %c0_28, %c0_29], %116 {strides = array<i32>} : memref<8x8x32xbf16, #tpu.memory_space<vmem>>, vector<1x8x32xbf16>,
    %c3_i32 = arith.constant 3 : i32
    %117 = arith.index_cast %c3_i32 : i32 to index
    %c0_30 = arith.constant 0 : index
    %c0_31 = arith.constant 0 : index
    %118 = vector.load %arg2[%117, %c0_30, %c0_31] : memref<8x8x128xbf16, #tpu.memory_space<vmem>>, vector<1x8x128xbf16>
    %119 = vector.shape_cast %118 : vector<1x8x128xbf16> to vector<8x128xbf16>
    %120 = arith.extf %119 : vector<8x128xbf16> to vector<8x128xf32>
    %121 = arith.truncf %111 : vector<8x32xf32> to vector<8x32xbf16>
    %cst_32 = arith.constant dense<0.000000e+00> : vector<8x128xf32>
    %122 = tpu.matmul %121, %3, %cst_32 {dimension_numbers = #tpu.dot_dimension_numbers<[1], [0], [0], [1], [0, 0, 1, 1], [], []>} : vector<8x32xbf16>, vector<32x128xbf16>, vector<8x128xf32> -> vector<8x128xf32>
    %123 = arith.addf %120, %122 : vector<8x128xf32>
    %124 = vector.extract_strided_slice %123 {offsets = [0, 0], sizes = [8, 32], strides = [1, 1]} : vector<8x128xf32> to vector<8x32xf32>
    %125 = arith.negf %124 : vector<8x32xf32>
    %126 = math.exp %125 : vector<8x32xf32>
    %cst_33 = arith.constant 1.000000e+00 : f32
    %127 = vector.broadcast %cst_33 : f32 to vector<8x32xf32>
    %128 = arith.addf %127, %126 : vector<8x32xf32>
    %129 = arith.divf %127, %128 : vector<8x32xf32>
    %130 = vector.extract_strided_slice %123 {offsets = [0, 32], sizes = [8, 32], strides = [1, 1]} : vector<8x128xf32> to vector<8x32xf32>
    %131 = arith.negf %130 : vector<8x32xf32>
    %132 = math.exp %131 : vector<8x32xf32>
    %cst_34 = arith.constant 1.000000e+00 : f32
    %133 = vector.broadcast %cst_34 : f32 to vector<8x32xf32>
    %134 = arith.addf %133, %132 : vector<8x32xf32>
    %135 = arith.divf %133, %134 : vector<8x32xf32>
    %136 = vector.extract_strided_slice %123 {offsets = [0, 64], sizes = [8, 32], strides = [1, 1]} : vector<8x128xf32> to vector<8x32xf32>
    %137 = math.tanh %136 : vector<8x32xf32>
    %138 = vector.extract_strided_slice %123 {offsets = [0, 96], sizes = [8, 32], strides = [1, 1]} : vector<8x128xf32> to vector<8x32xf32>
    %139 = arith.negf %138 : vector<8x32xf32>
    %140 = math.exp %139 : vector<8x32xf32>
    %cst_35 = arith.constant 1.000000e+00 : f32
    %141 = vector.broadcast %cst_35 : f32 to vector<8x32xf32>
    %142 = arith.addf %141, %140 : vector<8x32xf32>
    %143 = arith.divf %141, %142 : vector<8x32xf32>
    %144 = arith.mulf %135, %109 : vector<8x32xf32>
    %145 = arith.mulf %129, %137 : vector<8x32xf32>
    %146 = arith.addf %144, %145 : vector<8x32xf32>
    %147 = math.tanh %146 : vector<8x32xf32>
    %148 = arith.mulf %143, %147 : vector<8x32xf32>
    %149 = arith.truncf %148 : vector<8x32xf32> to vector<8x32xbf16>
    %150 = arith.index_cast %c3_i32 : i32 to index
    %c0_36 = arith.constant 0 : index
    %c0_37 = arith.constant 0 : index
    %151 = vector.load %arg6[%150, %c0_36, %c0_37] : memref<8x8x32xbf16, #tpu.memory_space<vmem>>, vector<1x8x32xbf16>
    %152 = vector.shape_cast %151 : vector<1x8x32xbf16> to vector<8x32xbf16>
    %153 = vector.shape_cast %149 : vector<8x32xbf16> to vector<1x8x32xbf16>
    tpu.vector_store %arg6[%150, %c0_36, %c0_37], %153 {strides = array<i32>} : memref<8x8x32xbf16, #tpu.memory_space<vmem>>, vector<1x8x32xbf16>,
    %c4_i32 = arith.constant 4 : i32
    %154 = arith.index_cast %c4_i32 : i32 to index
    %c0_38 = arith.constant 0 : index
    %c0_39 = arith.constant 0 : index
    %155 = vector.load %arg2[%154, %c0_38, %c0_39] : memref<8x8x128xbf16, #tpu.memory_space<vmem>>, vector<1x8x128xbf16>
    %156 = vector.shape_cast %155 : vector<1x8x128xbf16> to vector<8x128xbf16>
    %157 = arith.extf %156 : vector<8x128xbf16> to vector<8x128xf32>
    %158 = arith.truncf %148 : vector<8x32xf32> to vector<8x32xbf16>
    %cst_40 = arith.constant dense<0.000000e+00> : vector<8x128xf32>
    %159 = tpu.matmul %158, %3, %cst_40 {dimension_numbers = #tpu.dot_dimension_numbers<[1], [0], [0], [1], [0, 0, 1, 1], [], []>} : vector<8x32xbf16>, vector<32x128xbf16>, vector<8x128xf32> -> vector<8x128xf32>
    %160 = arith.addf %157, %159 : vector<8x128xf32>
    %161 = vector.extract_strided_slice %160 {offsets = [0, 0], sizes = [8, 32], strides = [1, 1]} : vector<8x128xf32> to vector<8x32xf32>
    %162 = arith.negf %161 : vector<8x32xf32>
    %163 = math.exp %162 : vector<8x32xf32>
    %cst_41 = arith.constant 1.000000e+00 : f32
    %164 = vector.broadcast %cst_41 : f32 to vector<8x32xf32>
    %165 = arith.addf %164, %163 : vector<8x32xf32>
    %166 = arith.divf %164, %165 : vector<8x32xf32>
    %167 = vector.extract_strided_slice %160 {offsets = [0, 32], sizes = [8, 32], strides = [1, 1]} : vector<8x128xf32> to vector<8x32xf32>
    %168 = arith.negf %167 : vector<8x32xf32>
    %169 = math.exp %168 : vector<8x32xf32>
    %cst_42 = arith.constant 1.000000e+00 : f32
    %170 = vector.broadcast %cst_42 : f32 to vector<8x32xf32>
    %171 = arith.addf %170, %169 : vector<8x32xf32>
    %172 = arith.divf %170, %171 : vector<8x32xf32>
    %173 = vector.extract_strided_slice %160 {offsets = [0, 64], sizes = [8, 32], strides = [1, 1]} : vector<8x128xf32> to vector<8x32xf32>
    %174 = math.tanh %173 : vector<8x32xf32>
    %175 = vector.extract_strided_slice %160 {offsets = [0, 96], sizes = [8, 32], strides = [1, 1]} : vector<8x128xf32> to vector<8x32xf32>
    %176 = arith.negf %175 : vector<8x32xf32>
    %177 = math.exp %176 : vector<8x32xf32>
    %cst_43 = arith.constant 1.000000e+00 : f32
    %178 = vector.broadcast %cst_43 : f32 to vector<8x32xf32>
    %179 = arith.addf %178, %177 : vector<8x32xf32>
    %180 = arith.divf %178, %179 : vector<8x32xf32>
    %181 = arith.mulf %172, %146 : vector<8x32xf32>
    %182 = arith.mulf %166, %174 : vector<8x32xf32>
    %183 = arith.addf %181, %182 : vector<8x32xf32>
    %184 = math.tanh %183 : vector<8x32xf32>
    %185 = arith.mulf %180, %184 : vector<8x32xf32>
    %186 = arith.truncf %185 : vector<8x32xf32> to vector<8x32xbf16>
    %187 = arith.index_cast %c4_i32 : i32 to index
    %c0_44 = arith.constant 0 : index
    %c0_45 = arith.constant 0 : index
    %188 = vector.load %arg6[%187, %c0_44, %c0_45] : memref<8x8x32xbf16, #tpu.memory_space<vmem>>, vector<1x8x32xbf16>
    %189 = vector.shape_cast %188 : vector<1x8x32xbf16> to vector<8x32xbf16>
    %190 = vector.shape_cast %186 : vector<8x32xbf16> to vector<1x8x32xbf16>
    tpu.vector_store %arg6[%187, %c0_44, %c0_45], %190 {strides = array<i32>} : memref<8x8x32xbf16, #tpu.memory_space<vmem>>, vector<1x8x32xbf16>,
    %c5_i32 = arith.constant 5 : i32
    %191 = arith.index_cast %c5_i32 : i32 to index
    %c0_46 = arith.constant 0 : index
    %c0_47 = arith.constant 0 : index
    %192 = vector.load %arg2[%191, %c0_46, %c0_47] : memref<8x8x128xbf16, #tpu.memory_space<vmem>>, vector<1x8x128xbf16>
    %193 = vector.shape_cast %192 : vector<1x8x128xbf16> to vector<8x128xbf16>
    %194 = arith.extf %193 : vector<8x128xbf16> to vector<8x128xf32>
    %195 = arith.truncf %185 : vector<8x32xf32> to vector<8x32xbf16>
    %cst_48 = arith.constant dense<0.000000e+00> : vector<8x128xf32>
    %196 = tpu.matmul %195, %3, %cst_48 {dimension_numbers = #tpu.dot_dimension_numbers<[1], [0], [0], [1], [0, 0, 1, 1], [], []>} : vector<8x32xbf16>, vector<32x128xbf16>, vector<8x128xf32> -> vector<8x128xf32>
    %197 = arith.addf %194, %196 : vector<8x128xf32>
    %198 = vector.extract_strided_slice %197 {offsets = [0, 0], sizes = [8, 32], strides = [1, 1]} : vector<8x128xf32> to vector<8x32xf32>
    %199 = arith.negf %198 : vector<8x32xf32>
    %200 = math.exp %199 : vector<8x32xf32>
    %cst_49 = arith.constant 1.000000e+00 : f32
    %201 = vector.broadcast %cst_49 : f32 to vector<8x32xf32>
    %202 = arith.addf %201, %200 : vector<8x32xf32>
    %203 = arith.divf %201, %202 : vector<8x32xf32>
    %204 = vector.extract_strided_slice %197 {offsets = [0, 32], sizes = [8, 32], strides = [1, 1]} : vector<8x128xf32> to vector<8x32xf32>
    %205 = arith.negf %204 : vector<8x32xf32>
    %206 = math.exp %205 : vector<8x32xf32>
    %cst_50 = arith.constant 1.000000e+00 : f32
    %207 = vector.broadcast %cst_50 : f32 to vector<8x32xf32>
    %208 = arith.addf %207, %206 : vector<8x32xf32>
    %209 = arith.divf %207, %208 : vector<8x32xf32>
    %210 = vector.extract_strided_slice %197 {offsets = [0, 64], sizes = [8, 32], strides = [1, 1]} : vector<8x128xf32> to vector<8x32xf32>
    %211 = math.tanh %210 : vector<8x32xf32>
    %212 = vector.extract_strided_slice %197 {offsets = [0, 96], sizes = [8, 32], strides = [1, 1]} : vector<8x128xf32> to vector<8x32xf32>
    %213 = arith.negf %212 : vector<8x32xf32>
    %214 = math.exp %213 : vector<8x32xf32>
    %cst_51 = arith.constant 1.000000e+00 : f32
    %215 = vector.broadcast %cst_51 : f32 to vector<8x32xf32>
    %216 = arith.addf %215, %214 : vector<8x32xf32>
    %217 = arith.divf %215, %216 : vector<8x32xf32>
    %218 = arith.mulf %209, %183 : vector<8x32xf32>
    %219 = arith.mulf %203, %211 : vector<8x32xf32>
    %220 = arith.addf %218, %219 : vector<8x32xf32>
    %221 = math.tanh %220 : vector<8x32xf32>
    %222 = arith.mulf %217, %221 : vector<8x32xf32>
    %223 = arith.truncf %222 : vector<8x32xf32> to vector<8x32xbf16>
    %224 = arith.index_cast %c5_i32 : i32 to index
    %c0_52 = arith.constant 0 : index
    %c0_53 = arith.constant 0 : index
    %225 = vector.load %arg6[%224, %c0_52, %c0_53] : memref<8x8x32xbf16, #tpu.memory_space<vmem>>, vector<1x8x32xbf16>
    %226 = vector.shape_cast %225 : vector<1x8x32xbf16> to vector<8x32xbf16>
    %227 = vector.shape_cast %223 : vector<8x32xbf16> to vector<1x8x32xbf16>
    tpu.vector_store %arg6[%224, %c0_52, %c0_53], %227 {strides = array<i32>} : memref<8x8x32xbf16, #tpu.memory_space<vmem>>, vector<1x8x32xbf16>,
    %c6_i32 = arith.constant 6 : i32
    %228 = arith.index_cast %c6_i32 : i32 to index
    %c0_54 = arith.constant 0 : index
    %c0_55 = arith.constant 0 : index
    %229 = vector.load %arg2[%228, %c0_54, %c0_55] : memref<8x8x128xbf16, #tpu.memory_space<vmem>>, vector<1x8x128xbf16>
    %230 = vector.shape_cast %229 : vector<1x8x128xbf16> to vector<8x128xbf16>
    %231 = arith.extf %230 : vector<8x128xbf16> to vector<8x128xf32>
    %232 = arith.truncf %222 : vector<8x32xf32> to vector<8x32xbf16>
    %cst_56 = arith.constant dense<0.000000e+00> : vector<8x128xf32>
    %233 = tpu.matmul %232, %3, %cst_56 {dimension_numbers = #tpu.dot_dimension_numbers<[1], [0], [0], [1], [0, 0, 1, 1], [], []>} : vector<8x32xbf16>, vector<32x128xbf16>, vector<8x128xf32> -> vector<8x128xf32>
    %234 = arith.addf %231, %233 : vector<8x128xf32>
    %235 = vector.extract_strided_slice %234 {offsets = [0, 0], sizes = [8, 32], strides = [1, 1]} : vector<8x128xf32> to vector<8x32xf32>
    %236 = arith.negf %235 : vector<8x32xf32>
    %237 = math.exp %236 : vector<8x32xf32>
    %cst_57 = arith.constant 1.000000e+00 : f32
    %238 = vector.broadcast %cst_57 : f32 to vector<8x32xf32>
    %239 = arith.addf %238, %237 : vector<8x32xf32>
    %240 = arith.divf %238, %239 : vector<8x32xf32>
    %241 = vector.extract_strided_slice %234 {offsets = [0, 32], sizes = [8, 32], strides = [1, 1]} : vector<8x128xf32> to vector<8x32xf32>
    %242 = arith.negf %241 : vector<8x32xf32>
    %243 = math.exp %242 : vector<8x32xf32>
    %cst_58 = arith.constant 1.000000e+00 : f32
    %244 = vector.broadcast %cst_58 : f32 to vector<8x32xf32>
    %245 = arith.addf %244, %243 : vector<8x32xf32>
    %246 = arith.divf %244, %245 : vector<8x32xf32>
    %247 = vector.extract_strided_slice %234 {offsets = [0, 64], sizes = [8, 32], strides = [1, 1]} : vector<8x128xf32> to vector<8x32xf32>
    %248 = math.tanh %247 : vector<8x32xf32>
    %249 = vector.extract_strided_slice %234 {offsets = [0, 96], sizes = [8, 32], strides = [1, 1]} : vector<8x128xf32> to vector<8x32xf32>
    %250 = arith.negf %249 : vector<8x32xf32>
    %251 = math.exp %250 : vector<8x32xf32>
    %cst_59 = arith.constant 1.000000e+00 : f32
    %252 = vector.broadcast %cst_59 : f32 to vector<8x32xf32>
    %253 = arith.addf %252, %251 : vector<8x32xf32>
    %254 = arith.divf %252, %253 : vector<8x32xf32>
    %255 = arith.mulf %246, %220 : vector<8x32xf32>
    %256 = arith.mulf %240, %248 : vector<8x32xf32>
    %257 = arith.addf %255, %256 : vector<8x32xf32>
    %258 = math.tanh %257 : vector<8x32xf32>
    %259 = arith.mulf %254, %258 : vector<8x32xf32>
    %260 = arith.truncf %259 : vector<8x32xf32> to vector<8x32xbf16>
    %261 = arith.index_cast %c6_i32 : i32 to index
    %c0_60 = arith.constant 0 : index
    %c0_61 = arith.constant 0 : index
    %262 = vector.load %arg6[%261, %c0_60, %c0_61] : memref<8x8x32xbf16, #tpu.memory_space<vmem>>, vector<1x8x32xbf16>
    %263 = vector.shape_cast %262 : vector<1x8x32xbf16> to vector<8x32xbf16>
    %264 = vector.shape_cast %260 : vector<8x32xbf16> to vector<1x8x32xbf16>
    tpu.vector_store %arg6[%261, %c0_60, %c0_61], %264 {strides = array<i32>} : memref<8x8x32xbf16, #tpu.memory_space<vmem>>, vector<1x8x32xbf16>,
    %c7_i32 = arith.constant 7 : i32
    %265 = arith.index_cast %c7_i32 : i32 to index
    %c0_62 = arith.constant 0 : index
    %c0_63 = arith.constant 0 : index
    %266 = vector.load %arg2[%265, %c0_62, %c0_63] : memref<8x8x128xbf16, #tpu.memory_space<vmem>>, vector<1x8x128xbf16>
    %267 = vector.shape_cast %266 : vector<1x8x128xbf16> to vector<8x128xbf16>
    %268 = arith.extf %267 : vector<8x128xbf16> to vector<8x128xf32>
    %269 = arith.truncf %259 : vector<8x32xf32> to vector<8x32xbf16>
    %cst_64 = arith.constant dense<0.000000e+00> : vector<8x128xf32>
    %270 = tpu.matmul %269, %3, %cst_64 {dimension_numbers = #tpu.dot_dimension_numbers<[1], [0], [0], [1], [0, 0, 1, 1], [], []>} : vector<8x32xbf16>, vector<32x128xbf16>, vector<8x128xf32> -> vector<8x128xf32>
    %271 = arith.addf %268, %270 : vector<8x128xf32>
    %272 = vector.extract_strided_slice %271 {offsets = [0, 0], sizes = [8, 32], strides = [1, 1]} : vector<8x128xf32> to vector<8x32xf32>
    %273 = arith.negf %272 : vector<8x32xf32>
    %274 = math.exp %273 : vector<8x32xf32>
    %cst_65 = arith.constant 1.000000e+00 : f32
    %275 = vector.broadcast %cst_65 : f32 to vector<8x32xf32>
    %276 = arith.addf %275, %274 : vector<8x32xf32>
    %277 = arith.divf %275, %276 : vector<8x32xf32>
    %278 = vector.extract_strided_slice %271 {offsets = [0, 32], sizes = [8, 32], strides = [1, 1]} : vector<8x128xf32> to vector<8x32xf32>
    %279 = arith.negf %278 : vector<8x32xf32>
    %280 = math.exp %279 : vector<8x32xf32>
    %cst_66 = arith.constant 1.000000e+00 : f32
    %281 = vector.broadcast %cst_66 : f32 to vector<8x32xf32>
    %282 = arith.addf %281, %280 : vector<8x32xf32>
    %283 = arith.divf %281, %282 : vector<8x32xf32>
    %284 = vector.extract_strided_slice %271 {offsets = [0, 64], sizes = [8, 32], strides = [1, 1]} : vector<8x128xf32> to vector<8x32xf32>
    %285 = math.tanh %284 : vector<8x32xf32>
    %286 = vector.extract_strided_slice %271 {offsets = [0, 96], sizes = [8, 32], strides = [1, 1]} : vector<8x128xf32> to vector<8x32xf32>
    %287 = arith.negf %286 : vector<8x32xf32>
    %288 = math.exp %287 : vector<8x32xf32>
    %cst_67 = arith.constant 1.000000e+00 : f32
    %289 = vector.broadcast %cst_67 : f32 to vector<8x32xf32>
    %290 = arith.addf %289, %288 : vector<8x32xf32>
    %291 = arith.divf %289, %290 : vector<8x32xf32>
    %292 = arith.mulf %283, %257 : vector<8x32xf32>
    %293 = arith.mulf %277, %285 : vector<8x32xf32>
    %294 = arith.addf %292, %293 : vector<8x32xf32>
    %295 = math.tanh %294 : vector<8x32xf32>
    %296 = arith.mulf %291, %295 : vector<8x32xf32>
    %297 = arith.truncf %296 : vector<8x32xf32> to vector<8x32xbf16>
    %298 = arith.index_cast %c7_i32 : i32 to index
    %c0_68 = arith.constant 0 : index
    %c0_69 = arith.constant 0 : index
    %299 = vector.load %arg6[%298, %c0_68, %c0_69] : memref<8x8x32xbf16, #tpu.memory_space<vmem>>, vector<1x8x32xbf16>
    %300 = vector.shape_cast %299 : vector<1x8x32xbf16> to vector<8x32xbf16>
    %301 = vector.shape_cast %297 : vector<8x32xbf16> to vector<1x8x32xbf16>
    tpu.vector_store %arg6[%298, %c0_68, %c0_69], %301 {strides = array<i32>} : memref<8x8x32xbf16, #tpu.memory_space<vmem>>, vector<1x8x32xbf16>,
    %c8_i32 = arith.constant 8 : i32
    %c0_70 = arith.constant 0 : index
    %c0_71 = arith.constant 0 : index
    %302 = vector.load %arg7[%c0_70, %c0_71] : memref<8x32xf32, #tpu.memory_space<vmem>>, vector<8x32xf32>
    tpu.vector_store %arg7[%c0_70, %c0_71], %296 {strides = array<i32>} : memref<8x32xf32, #tpu.memory_space<vmem>>, vector<8x32xf32>,
    %c0_72 = arith.constant 0 : index
    %c0_73 = arith.constant 0 : index
    %303 = vector.load %arg8[%c0_72, %c0_73] : memref<8x32xf32, #tpu.memory_space<vmem>>, vector<8x32xf32>
    tpu.vector_store %arg8[%c0_72, %c0_73], %294 {strides = array<i32>} : memref<8x32xf32, #tpu.memory_space<vmem>>, vector<8x32xf32>,
    return
  }
  func.func @transform_0(%arg0: i32, %arg1: i32) -> (i32, i32, i32) {
    %c0_i32 = arith.constant 0 : i32
    %c0_i32_0 = arith.constant 0 : i32
    return %arg1, %arg0, %c0_i32 : i32, i32, i32
  }
  func.func @transform_1(%arg0: i32, %arg1: i32) -> (i32, i32) {
    %c0_i32 = arith.constant 0 : i32
    %c0_i32_0 = arith.constant 0 : i32
    %c0_i32_1 = arith.constant 0 : i32
    return %c0_i32, %c0_i32_0 : i32, i32
  }
  func.func @transform_2(%arg0: i32, %arg1: i32) -> (i32, i32) {
    %c0_i32 = arith.constant 0 : i32
    %c0_i32_0 = arith.constant 0 : i32
    return %arg0, %c0_i32 : i32, i32
  }
  func.func @transform_3(%arg0: i32, %arg1: i32) -> (i32, i32) {
    %c0_i32 = arith.constant 0 : i32
    %c0_i32_0 = arith.constant 0 : i32
    return %arg0, %c0_i32 : i32, i32
  }
  func.func @transform_4(%arg0: i32, %arg1: i32) -> (i32, i32, i32) {
    %c0_i32 = arith.constant 0 : i32
    %c0_i32_0 = arith.constant 0 : i32
    return %arg1, %arg0, %c0_i32 : i32, i32, i32
  }
}

module attributes {stable_mosaic.version = 11 : i64} {
  func.func @_matmul_bias_kernel(%arg0: i32, %arg1: i32, %arg2: memref<64x32xbf16, #tpu.memory_space<vmem>>, %arg3: memref<32x128xbf16, #tpu.memory_space<vmem>>, %arg4: memref<1x128xf32, #tpu.memory_space<vmem>>, %arg5: memref<64x128xf32, #tpu.memory_space<vmem>>) attributes {dimension_semantics = [#tpu.dimension_semantics<parallel>, #tpu.dimension_semantics<parallel>], iteration_bounds = array<i64: 1, 1>, scalar_prefetch = 0 : i64, scratch_operands = 0 : i64, tpu.core_type = #tpu.core_type<tc>, window_params = [{transform_indices = @transform_0, window_bounds = array<i64: 64, 32>}, {pipeline_mode = #tpu.pipeline_mode<synchronous>, transform_indices = @transform_1, window_bounds = array<i64: 32, 128>}, {pipeline_mode = #tpu.pipeline_mode<synchronous>, transform_indices = @transform_2, window_bounds = array<i64: 1, 128>}, {transform_indices = @transform_3, window_bounds = array<i64: 64, 128>}]} {
    %c0 = arith.constant 0 : index
    %c0_0 = arith.constant 0 : index
    %0 = vector.load %arg2[%c0, %c0_0] : memref<64x32xbf16, #tpu.memory_space<vmem>>, vector<64x32xbf16>
    %c0_1 = arith.constant 0 : index
    %c0_2 = arith.constant 0 : index
    %1 = vector.load %arg3[%c0_1, %c0_2] : memref<32x128xbf16, #tpu.memory_space<vmem>>, vector<32x128xbf16>
    %cst = arith.constant dense<0.000000e+00> : vector<64x128xf32>
    %2 = tpu.matmul %0, %1, %cst {dimension_numbers = #tpu.dot_dimension_numbers<[1], [0], [0], [1], [0, 0, 1, 1], [], []>} : vector<64x32xbf16>, vector<32x128xbf16>, vector<64x128xf32> -> vector<64x128xf32>
    %c0_3 = arith.constant 0 : index
    %c0_4 = arith.constant 0 : index
    %3 = vector.load %arg4[%c0_3, %c0_4] : memref<1x128xf32, #tpu.memory_space<vmem>>, vector<1x128xf32>
    %4 = vector.broadcast %3 : vector<1x128xf32> to vector<64x128xf32>
    %5 = arith.addf %2, %4 : vector<64x128xf32>
    %c0_5 = arith.constant 0 : index
    %c0_6 = arith.constant 0 : index
    %6 = vector.load %arg5[%c0_5, %c0_6] : memref<64x128xf32, #tpu.memory_space<vmem>>, vector<64x128xf32>
    tpu.vector_store %arg5[%c0_5, %c0_6], %5 {strides = array<i32>} : memref<64x128xf32, #tpu.memory_space<vmem>>, vector<64x128xf32>,
    return
  }
  func.func @transform_0(%arg0: i32, %arg1: i32) -> (i32, i32) {
    %c0_i32 = arith.constant 0 : i32
    %c0_i32_0 = arith.constant 0 : i32
    return %arg0, %c0_i32 : i32, i32
  }
  func.func @transform_1(%arg0: i32, %arg1: i32) -> (i32, i32) {
    %c0_i32 = arith.constant 0 : i32
    %c0_i32_0 = arith.constant 0 : i32
    %c0_i32_1 = arith.constant 0 : i32
    return %c0_i32, %c0_i32_0 : i32, i32
  }
  func.func @transform_2(%arg0: i32, %arg1: i32) -> (i32, i32) {
    %c0_i32 = arith.constant 0 : i32
    %c0_i32_0 = arith.constant 0 : i32
    %c0_i32_1 = arith.constant 0 : i32
    return %c0_i32, %c0_i32_0 : i32, i32
  }
  func.func @transform_3(%arg0: i32, %arg1: i32) -> (i32, i32) {
    %c0_i32 = arith.constant 0 : i32
    return %arg0, %arg1 : i32, i32
  }
}

</mosaic_0001>

<bundles_post_ra>
// kernel: lstm_model_forward.7
= control target key start
LH: loop header
LB: loop body
LE: loop exit
PB: predicated region body
PF: predicated region fallthrough
CT: control target
= control target key end

     0   :  { %vm66_vm0 = vcmask 261120   ;;  %s319_s1 = inlined_call_operand.vmem [shape: bf16[32,128], index: 1, kind: input, shape index: {}]   ;;  %s320_s0 = inlined_call_operand.vmem [shape: bf16[64,32], index: 0, kind: input, shape index: {}]   ;;  %s321_s2 = inlined_call_operand.vmem [shape: f32[1,128], index: 2, kind: input, shape index: {}]   ;;  %s322_s3 = inlined_call_operand.vmem [shape: bf16[64,128], index: 3, kind: output, shape index: {}]  }
   0x1   :  { %v260_v0 = vld [vmem:[%s319_s1] sm:$0xff]   ;;  %v261_v1 = vld [vmem:[%s319_s1 + $0x8] sm:$0xff]   ;;  %v263_v3 = vld [vmem:[%s320_s0 + $0x10] sm:$0xff]  }
   0x2   :  { %244 = vmatprep.subr.bf16.mxu0 %v260_v0  ;;  %256 = vmatprep.subr.bf16.mxu1 %v260_v0  ;;  %v262_v2 = vld [vmem:[%s320_s0] sm:$0xff]   ;;  %v264_v4 = vld [vmem:[%s320_s0 + $0x8] sm:$0xff]   ;;  %v265_v5 = vld [vmem:[%s320_s0 + $0x18] sm:$0xff]  }
   0x3   :  { %245 = vmatpush3.bf16.msra.mxu0 %v260_v0  ;;  %258 = vmatpush3.bf16.msra.mxu1 %v260_v0  ;;  %v188_v7 = vld [vmem:[%s321_s2] ss:$0 sm:$0xff] }
   0x4   :  { %246 = vmatprep.subr.bf16.mxu0 %v261_v1  ;;  %257 = vmatprep.subr.bf16.mxu1 %v261_v1 }
   0x5   :  { %248 = vmatprep.mubr.msk.bf16.mxu0 %vm66_vm0, %v262_v2  ;;  %252 = vmatprep.mubr.msk.bf16.mxu1 %vm66_vm0, %v263_v3 }
   0x7   :  { %247 = vmatpush3.bf16.msra.mxu0 %v261_v1  ;;  %259 = vmatpush3.bf16.msra.mxu1 %v261_v1 }
   0xa   :  { %249 = vmatmul.mubr.msk.bf16.vlgmr.msra.gmra.mrb[0].mxu0 %vm66_vm0, %v264_v4  ;;  %253 = vmatmul.mubr.msk.bf16.vlgmr.msra.gmra.mrb[0].mxu1 %vm66_vm0, %v265_v5 }
  0xdd   :  { %v250_v6 = vpop.f32.mrb[0].mxu0  ;;  %v254_v8 = vpop.f32.mrb[0].mxu1 }
  0xde   :  { %v113_v9 = vpop.f32.mrb[1].mxu0  ;;  %v129_v10 = vpop.f32.mrb[1].mxu1  ;;  %v122_v13 = vadd.f32 %v250_v6, %v188_v7  ;;  %v138_v14 = vadd.f32 %v254_v8, %v188_v7 }
  0xdf   :  { %v251_v11 = vpop.f32.mrb[2].mxu0  ;;  %v255_v12 = vpop.f32.mrb[2].mxu1  ;;  %v114_v19 = vadd.f32 %v188_v7, %v113_v9  ;;  %v130_v20 = vadd.f32 %v188_v7, %v129_v10 }
  0xe0   :  { %v125_v15 = vadd.f32 %v251_v11, %v188_v7  ;;  %v141_v16 = vadd.f32 %v255_v12, %v188_v7  ;;  %v116_v17 = vpop.f32.mrb[3].mxu0  ;;  %v132_v18 = vpop.f32.mrb[3].mxu1 }
  0xe1   :  { %v117_v21 = vadd.f32 %v188_v7, %v116_v17  ;;  %v133_v22 = vadd.f32 %v188_v7, %v132_v18 }
  0xe2   :  { %v223_v23 = vpack.c.bf16 %v125_v15, %v122_v13  ;;  %v233_v24 = vpack.c.bf16 %v141_v16, %v138_v14 }
  0xe3   :  { %v218_v25 = vpack.c.bf16 %v117_v21, %v114_v19  ;;  %v228_v26 = vpack.c.bf16 %v133_v22, %v130_v20 }
  0xe4   :  { %235 = vst [vmem:[%s322_s3 + $0x8] sm:$0xff] %v223_v23   ;;  %237 = vst [vmem:[%s322_s3 + $0x18] sm:$0xff] %v233_v24  }
  0xe5   :  { %219 = vst [vmem:[%s322_s3] sm:$0xff] %v218_v25   ;;  %236 = vst [vmem:[%s322_s3 + $0x10] sm:$0xff] %v228_v26  }

// kernel: lstm_model_forward.5
= control target key start
LH: loop header
LB: loop body
LE: loop exit
PB: predicated region body
PF: predicated region fallthrough
CT: control target
= control target key end

     0   :  { %vm58_vm0 = vcmask 130048   ;;  %s301_s1 = inlined_call_operand.vmem [shape: bf16[16,128], index: 1, kind: input, shape index: {}]   ;;  %s302_s0 = inlined_call_operand.vmem [shape: bf16[64,16], index: 0, kind: input, shape index: {}]   ;;  %s303_s2 = inlined_call_operand.vmem [shape: f32[1,128], index: 2, kind: input, shape index: {}]   ;;  %s304_s3 = inlined_call_operand.vmem [shape: bf16[64,128], index: 3, kind: output, shape index: {}]  }
   0x1   :  { %v246_v0 = vld [vmem:[%s301_s1] sm:$0xff]   ;;  %v248_v2 = vld [vmem:[%s302_s0 + $0x10] sm:$0xff]   ;;  %v249_v3 = vld [vmem:[%s302_s0 + $0x8] sm:$0xff]  }
   0x2   :  { %v247_v1 = vld [vmem:[%s302_s0] sm:$0xff]   ;;  %234 = vmatprep.subr.bf16.mxu0 %v246_v0  ;;  %244 = vmatprep.subr.bf16.mxu1 %v246_v0  ;;  %v250_v4 = vld [vmem:[%s302_s0 + $0x18] sm:$0xff]  }
   0x3   :  { %235 = vmatpush3.bf16.msra.mxu0 %v246_v0  ;;  %245 = vmatpush3.bf16.msra.mxu1 %v246_v0  ;;  %v180_v6 = vld [vmem:[%s303_s2] ss:$0 sm:$0xff] }
   0x4   :  { %236 = vmatprep.mubr.msk.bf16.mxu0 %vm58_vm0, %v247_v1  ;;  %240 = vmatprep.mubr.msk.bf16.mxu1 %vm58_vm0, %v248_v2 }
   0x6   :  { %237 = vmatmul.mubr.msk.bf16.vlgmr.msra.gmra.mrb[0].mxu0 %vm58_vm0, %v249_v3  ;;  %241 = vmatmul.mubr.msk.bf16.vlgmr.msra.gmra.mrb[0].mxu1 %vm58_vm0, %v250_v4 }
  0xd9   :  { %v238_v5 = vpop.f32.mrb[0].mxu0  ;;  %v242_v7 = vpop.f32.mrb[0].mxu1 }
  0xda   :  { %v105_v8 = vpop.f32.mrb[1].mxu0  ;;  %v121_v9 = vpop.f32.mrb[1].mxu1  ;;  %v114_v12 = vadd.f32 %v238_v5, %v180_v6  ;;  %v130_v13 = vadd.f32 %v242_v7, %v180_v6 }
  0xdb   :  { %v239_v10 = vpop.f32.mrb[2].mxu0  ;;  %v243_v11 = vpop.f32.mrb[2].mxu1  ;;  %v106_v18 = vadd.f32 %v180_v6, %v105_v8  ;;  %v122_v19 = vadd.f32 %v180_v6, %v121_v9 }
  0xdc   :  { %v117_v14 = vadd.f32 %v239_v10, %v180_v6  ;;  %v133_v15 = vadd.f32 %v243_v11, %v180_v6  ;;  %v108_v16 = vpop.f32.mrb[3].mxu0  ;;  %v124_v17 = vpop.f32.mrb[3].mxu1 }
  0xdd   :  { %v109_v20 = vadd.f32 %v180_v6, %v108_v16  ;;  %v125_v21 = vadd.f32 %v180_v6, %v124_v17 }
  0xde   :  { %v214_v22 = vpack.c.bf16 %v117_v14, %v114_v12  ;;  %v224_v23 = vpack.c.bf16 %v133_v15, %v130_v13 }
  0xdf   :  { %v209_v24 = vpack.c.bf16 %v109_v20, %v106_v18  ;;  %v219_v25 = vpack.c.bf16 %v125_v21, %v122_v19 }
  0xe0   :  { %226 = vst [vmem:[%s304_s3 + $0x8] sm:$0xff] %v214_v22   ;;  %228 = vst [vmem:[%s304_s3 + $0x18] sm:$0xff] %v224_v23  }
  0xe1   :  { %210 = vst [vmem:[%s304_s3] sm:$0xff] %v209_v24   ;;  %227 = vst [vmem:[%s304_s3 + $0x10] sm:$0xff] %v219_v25  }

// kernel: lstm_model_forward.9
= control target key start
LH: loop header
LB: loop body
LE: loop exit
PB: predicated region body
PF: predicated region fallthrough
CT: control target
= control target key end

     0   :  { %vm66_vm0 = vcmask 261120   ;;  %s260_s1 = inlined_call_operand.vmem [shape: bf16[32,128], index: 1, kind: input, shape index: {}]   ;;  %s261_s0 = inlined_call_operand.vmem [shape: bf16[64,32], index: 0, kind: input, shape index: {}]   ;;  %s262_s2 = inlined_call_operand.vmem [shape: f32[1,128], index: 2, kind: input, shape index: {}]   ;;  %s263_s3 = inlined_call_operand.vmem [shape: f32[64,128], index: 3, kind: output, shape index: {}]  }
   0x1   :  { %v189_v0 = vld [vmem:[%s260_s1] sm:$0xff]   ;;  %v190_v1 = vld [vmem:[%s260_s1 + $0x8] sm:$0xff]   ;;  %v192_v3 = vld [vmem:[%s261_s0 + $0x10] sm:$0xff]  }
   0x2   :  { %173 = vmatprep.subr.bf16.mxu0 %v189_v0  ;;  %185 = vmatprep.subr.bf16.mxu1 %v189_v0  ;;  %v191_v2 = vld [vmem:[%s261_s0] sm:$0xff]   ;;  %v193_v4 = vld [vmem:[%s261_s0 + $0x8] sm:$0xff]   ;;  %v194_v5 = vld [vmem:[%s261_s0 + $0x18] sm:$0xff]  }
   0x3   :  { %174 = vmatpush3.bf16.msra.mxu0 %v189_v0  ;;  %187 = vmatpush3.bf16.msra.mxu1 %v189_v0  ;;  %v156_v6 = vld [vmem:[%s262_s2] ss:$0 sm:$0xff] }
   0x4   :  { %175 = vmatprep.subr.bf16.mxu0 %v190_v1  ;;  %186 = vmatprep.subr.bf16.mxu1 %v190_v1 }
   0x5   :  { %177 = vmatprep.mubr.msk.bf16.mxu0 %vm66_vm0, %v191_v2  ;;  %181 = vmatprep.mubr.msk.bf16.mxu1 %vm66_vm0, %v192_v3 }
   0x7   :  { %176 = vmatpush3.bf16.msra.mxu0 %v190_v1  ;;  %188 = vmatpush3.bf16.msra.mxu1 %v190_v1 }
   0xa   :  { %178 = vmatmul.mubr.msk.bf16.vlgmr.msra.gmra.mrb[0].mxu0 %vm66_vm0, %v193_v4  ;;  %182 = vmatmul.mubr.msk.bf16.vlgmr.msra.gmra.mrb[0].mxu1 %vm66_vm0, %v194_v5 }
  0xdd   :  { %v179_v7 = vpop.f32.mrb[0].mxu0  ;;  %v183_v8 = vpop.f32.mrb[0].mxu1 }
  0xde   :  { %v122_v9 = vadd.f32 %v179_v7, %v156_v6  ;;  %v138_v10 = vadd.f32 %v183_v8, %v156_v6  ;;  %v113_v11 = vpop.f32.mrb[1].mxu0  ;;  %v129_v12 = vpop.f32.mrb[1].mxu1 }
  0xdf   :  { %v114_v13 = vadd.f32 %v156_v6, %v113_v11  ;;  %v130_v14 = vadd.f32 %v156_v6, %v129_v12  ;;  %v180_v15 = vpop.f32.mrb[2].mxu0  ;;  %v184_v16 = vpop.f32.mrb[2].mxu1 }
  0xe0   :  { %146 = vst [vmem:[%s263_s3 + $0x10] sm:$0xff] %v122_v9  ;;  %150 = vst [vmem:[%s263_s3 + $0x30] sm:$0xff] %v138_v10  ;;  %v125_v17 = vadd.f32 %v180_v15, %v156_v6  ;;  %v141_v18 = vadd.f32 %v184_v16, %v156_v6  ;;  %v116_v19 = vpop.f32.mrb[3].mxu0  ;;  %v132_v20 = vpop.f32.mrb[3].mxu1 }
  0xe1   :  { %144 = vst [vmem:[%s263_s3] sm:$0xff] %v114_v13  ;;  %148 = vst [vmem:[%s263_s3 + $0x20] sm:$0xff] %v130_v14  ;;  %v117_v21 = vadd.f32 %v156_v6, %v116_v19  ;;  %v133_v22 = vadd.f32 %v156_v6, %v132_v20 }
  0xe2   :  { %147 = vst [vmem:[%s263_s3 + $0x18] sm:$0xff] %v125_v17  ;;  %151 = vst [vmem:[%s263_s3 + $0x38] sm:$0xff] %v141_v18 }
  0xe3   :  { %145 = vst [vmem:[%s263_s3 + $0x8] sm:$0xff] %v117_v21  ;;  %149 = vst [vmem:[%s263_s3 + $0x28] sm:$0xff] %v133_v22 }

// kernel: lstm_model_forward.6
= control target key start
LH: loop header
LB: loop body
LE: loop exit
PB: predicated region body
PF: predicated region fallthrough
CT: control target
= control target key end

     0   :  { %v925_v0 = vmov 0.0   ;;  %vm926_vm0 = vmmov 0   ;;  %vm23_vm1 = vcmask 261120   ;;  %s927_s23 = smov 64   ;;  %s928_s24 = smov 32   ;;  %vm128_vm2 = vcmask 257024   ;;  %s1143_s1 = inlined_call_operand.vmem [shape: bf16[32,128], index: 1, kind: input, shape index: {}]   ;;  %s1144_s2 = inlined_call_operand.vmem [shape: f32[8,32], index: 2, kind: input, shape index: {}]   ;;  %s1145_s3 = inlined_call_operand.vmem [shape: f32[8,32], index: 3, kind: input, shape index: {}]   ;;  %s1146_s0 = inlined_call_operand.vmem [shape: bf16[8,8,128], index: 0, kind: input, shape index: {}]   ;;  %s1147_s4 = inlined_call_operand.vmem [shape: bf16[8,8,32], index: 4, kind: output, shape index: {}]  }
   0x1   :  { %790 = vmatprep.subr.bf16.mxu0 %v925_v0  ;;  %v959_v1 = vld [vmem:[%s1143_s1] sm:$0xff]   ;;  %794 = vmatprep.mubr.msk.bf16.mxu0 %vm926_vm0, %v925_v0  ;;  %v970_v2 = vld [vmem:[%s1143_s1 + $0x8] sm:$0xff]   ;;  %s929_s17 = smov 96  }
   0x2   :  { %798 = vmatprep.subr.bf16.mxu1 %v925_v0  ;;  %802 = vmatprep.mubr.msk.bf16.mxu1 %vm926_vm0, %v925_v0  ;;  %v22_v3 = vld [vmem:[%s1144_s2] sm:$0xff] }
   0x3   :  { %791 = vmatpush3.bf16.msra.mxu0 %v959_v1  ;;  %799 = vmatpush3.bf16.msra.mxu1 %v959_v1  ;;  %24 = vst.msk [vmem:[#allocation2] sm:$0xff] %vm23_vm1, %v22_v3  ;;  %v25_v6 = vld [vmem:[%s1145_s3] sm:$0xff] }
   0x4   :  { %792 = vmatprep.subr.bf16.mxu0 %v925_v0  ;;  %800 = vmatprep.subr.bf16.mxu1 %v925_v0  ;;  %26 = vst.msk [vmem:[#allocation3] sm:$0xff] %vm23_vm1, %v25_v6  ;;  %v33_v7 = vld [vmem:[%s1146_s0] sm:$0xf]  ;;  %v723_v31 = vld [vmem:[%s1146_s0 + $0x4] sm:$0xff]  }
   0x5   :  { %v34_v8 = vunpack.c.l.bf16 %v33_v7  ;;  %v132_v32 = vunpack.c.l.bf16 %v723_v31  ;;  %v214_v53 = vunpack.c.h.bf16 %v723_v31 }
   0x7   :  { %793 = vmatpush3.bf16.msra.mxu0 %v970_v2  ;;  %801 = vmatpush3.bf16.msra.mxu1 %v970_v2 }
   0x8   :  { %806 = vmatprep.subr.bf16.mxu0 %v925_v0  ;;  %814 = vmatprep.subr.bf16.mxu1 %v925_v0 }
   0xa   :  { %v31_v4 = vld [vmem:[#allocation2] sm:$0xff] }
   0xb   :  { %v35_v5 = vpack.c.bf16 %v31_v4, %v31_v4  ;;  %v32_v15 = vld [vmem:[#allocation3] sm:$0xff] }
   0xd   :  { %795 = vmatmul.mubr.msk.bf16.vlgmr.msra.gmra.mrb[0].mxu0 %vm23_vm1, %v35_v5 }
   0xe   :  { %807 = vmatpush3.bf16.msra.mxu0 %v959_v1  ;;  %810 = vmatprep.mubr.msk.bf16.mxu0 %vm926_vm0, %v925_v0 }
   0xf   :  { %808 = vmatprep.subr.bf16.mxu0 %v925_v0 }
  0x12   :  { %809 = vmatpush3.bf16.msra.mxu0 %v970_v2 }
  0x13   :  { %822 = vmatprep.subr.bf16.mxu0 %v925_v0 }
  0xe0   :  { %v86_v9 = vpop.f32.mrb[0].mxu0 }
  0xe1   :  { %v92_v10 = vadd.f32 %v86_v9, %v34_v8  ;;  %v796_v11 = vpop.f32.mrb[1].mxu0 }
  0xe2   :  { %v89_v12 = vpop.f32.mrb[2].mxu0 }
  0xe3   :  { %861 = vtanh.f32 %v92_v10  ;;  %v797_v13 = vpop.f32.mrb[3].mxu0  ;;  %v721_v16 = vmul.f32 -1.442695, %v92_v10 }
  0xe4   :  { %v733_v13 = vld [vmem:[%s1146_s0 + $0xc] sm:$0xff]  }
  0xe5   :  { %863 = vpow2.f32 %v721_v16 }
  0xed   :  { %v862_v14 = vpop.eup %861 }
  0xee   :  { %106 = vrot.lane.b32.xlu0 %v862_v14, %s927_s23  ;;  %v296_v14 = vunpack.c.l.bf16 %v733_v13 }
  0xef   :  { %v864_v17 = vpop.eup %863 }
  0xf0   :  { %v96_v18 = vadd.f32 1.0, %v864_v17 }
  0xf2   :  { %101 = vrot.lane.b32.xlu0 %v32_v15, %s928_s24  ;;  %865 = vrcp.f32 %v96_v18 }
  0xfc   :  { %v866_v19 = vpop.eup %865 }
 0x160   :  { %v107_v20 = vpop.permute.xlu0 %106 }
 0x161   :  { %v109_v21 = vmul.f32 %v866_v19, %v107_v20 }
 0x163   :  { %111 = vrot.lane.b32.xlu1 %v109_v21, %s928_s24 }
 0x164   :  { %v102_v22 = vpop.permute.xlu0 %101 }
 0x165   :  { %v104_v23 = vmul.f32 %v866_v19, %v102_v22 }
 0x1d5   :  { %v112_v24 = vpop.permute.xlu1 %111 }
 0x1d6   :  { %v114_v25 = vadd.f32 %v112_v24, %v104_v23 }
 0x1d8   :  { %867 = vtanh.f32 %v114_v25 }
 0x1e2   :  { %v868_v26 = vpop.eup %867 }
 0x1e3   :  { %117 = vrot.lane.b32.xlu1 %v868_v26, %s927_s23 }
 0x255   :  { %v118_v27 = vpop.permute.xlu1 %117 }
 0x256   :  { %v120_v28 = vmul.f32 %v866_v19, %v118_v27 }
 0x258   :  { %v1001_v29 = vpack.c.bf16 %v120_v28, %v120_v28 }
 0x25a   :  { %133 = vrot.lane.b32.xlu0 %v1001_v29, %s928_s24 }
 0x2cc   :  { %v134_v30 = vpop.permute.xlu0 %133 }
 0x2cd   :  { %803 = vmatmul.mubr.msk.bf16.vlgmr.msra.gmra.mrb[0].mxu1 %vm23_vm1, %v134_v30 }
 0x2ce   :  { %815 = vmatpush3.bf16.msra.mxu1 %v959_v1  ;;  %818 = vmatprep.mubr.msk.bf16.mxu1 %vm926_vm0, %v925_v0 }
 0x2cf   :  { %816 = vmatprep.subr.bf16.mxu1 %v925_v0 }
 0x2d2   :  { %817 = vmatpush3.bf16.msra.mxu1 %v970_v2 }
 0x2d3   :  { %830 = vmatprep.subr.bf16.mxu1 %v925_v0 }
 0x3a0   :  { %v172_v33 = vpop.f32.mrb[0].mxu1 }
 0x3a1   :  { %v178_v34 = vadd.f32 %v172_v33, %v132_v32  ;;  %v804_v35 = vpop.f32.mrb[1].mxu1 }
 0x3a2   :  { %v175_v36 = vpop.f32.mrb[2].mxu1 }
 0x3a3   :  { %869 = vtanh.f32 %v178_v34  ;;  %v805_v37 = vpop.f32.mrb[3].mxu1  ;;  %v725_v39 = vmul.f32 -1.442695, %v178_v34  ;;  %v378_v36 = vunpack.c.h.bf16 %v733_v13 }
 0x3a5   :  { %871 = vpow2.f32 %v725_v39 }
 0x3ad   :  { %v870_v38 = vpop.eup %869 }
 0x3ae   :  { %188 = vrot.lane.b32.xlu1 %v870_v38, %s927_s23 }
 0x3af   :  { %v872_v40 = vpop.eup %871 }
 0x3b0   :  { %v182_v41 = vadd.f32 1.0, %v872_v40 }
 0x3b2   :  { %873 = vrcp.f32 %v182_v41 }
 0x3bc   :  { %v874_v42 = vpop.eup %873 }
 0x3bd   :  { %v186_v45 = vmul.f32 %v874_v42, %v114_v25 }
 0x420   :  { %v189_v43 = vpop.permute.xlu1 %188 }
 0x421   :  { %v191_v44 = vmul.f32 %v874_v42, %v189_v43 }
 0x423   :  { %193 = vrot.lane.b32.xlu0 %v191_v44, %s928_s24 }
 0x495   :  { %v194_v46 = vpop.permute.xlu0 %193 }
 0x496   :  { %v196_v47 = vadd.f32 %v194_v46, %v186_v45 }
 0x498   :  { %875 = vtanh.f32 %v196_v47 }
 0x4a2   :  { %v876_v48 = vpop.eup %875 }
 0x4a3   :  { %199 = vrot.lane.b32.xlu1 %v876_v48, %s927_s23 }
 0x515   :  { %v200_v49 = vpop.permute.xlu1 %199 }
 0x516   :  { %v202_v50 = vmul.f32 %v874_v42, %v200_v49 }
 0x518   :  { %v1018_v51 = vpack.c.bf16 %v202_v50, %v202_v50 }
 0x51a   :  { %215 = vrot.lane.b32.xlu0 %v1018_v51, %s928_s24 }
 0x58c   :  { %v216_v52 = vpop.permute.xlu0 %215 }
 0x58d   :  { %811 = vmatmul.mubr.msk.bf16.vlgmr.msra.gmra.mrb[4].mxu0 %vm23_vm1, %v216_v52 }
 0x58e   :  { %823 = vmatpush3.bf16.msra.mxu0 %v959_v1  ;;  %826 = vmatprep.mubr.msk.bf16.mxu0 %vm926_vm0, %v925_v0 }
 0x58f   :  { %824 = vmatprep.subr.bf16.mxu0 %v925_v0 }
 0x592   :  { %825 = vmatpush3.bf16.msra.mxu0 %v970_v2 }
 0x593   :  { %838 = vmatprep.subr.bf16.mxu0 %v925_v0 }
 0x660   :  { %v254_v54 = vpop.f32.mrb[4].mxu0 }
 0x661   :  { %v260_v55 = vadd.f32 %v254_v54, %v214_v53  ;;  %v812_v56 = vpop.f32.mrb[5].mxu0 }
 0x662   :  { %v257_v57 = vpop.f32.mrb[6].mxu0 }
 0x663   :  { %877 = vtanh.f32 %v260_v55  ;;  %v813_v58 = vpop.f32.mrb[7].mxu0  ;;  %v730_v60 = vmul.f32 -1.442695, %v260_v55 }
 0x664   :  { %v743_v58 = vld [vmem:[%s1146_s0 + $0x14] sm:$0xff]  }
 0x665   :  { %879 = vpow2.f32 %v730_v60 }
 0x66d   :  { %v878_v59 = vpop.eup %877 }
 0x66e   :  { %270 = vrot.lane.b32.xlu1 %v878_v59, %s927_s23  ;;  %v460_v59 = vunpack.c.l.bf16 %v743_v58 }
 0x66f   :  { %v880_v61 = vpop.eup %879 }
 0x670   :  { %v264_v62 = vadd.f32 1.0, %v880_v61 }
 0x672   :  { %881 = vrcp.f32 %v264_v62 }
 0x67c   :  { %v882_v63 = vpop.eup %881 }
 0x67d   :  { %v268_v5 = vmul.f32 %v882_v63, %v196_v47 }
 0x6e0   :  { %v271_v3 = vpop.permute.xlu1 %270 }
 0x6e1   :  { %v273_v4 = vmul.f32 %v882_v63, %v271_v3 }
 0x6e3   :  { %275 = vrot.lane.b32.xlu0 %v273_v4, %s928_s24 }
 0x755   :  { %v276_v6 = vpop.permute.xlu0 %275 }
 0x756   :  { %v278_v7 = vadd.f32 %v276_v6, %v268_v5 }
 0x758   :  { %883 = vtanh.f32 %v278_v7 }
 0x762   :  { %v884_v8 = vpop.eup %883 }
 0x763   :  { %281 = vrot.lane.b32.xlu1 %v884_v8, %s927_s23 }
 0x7d5   :  { %v282_v9 = vpop.permute.xlu1 %281 }
 0x7d6   :  { %v284_v10 = vmul.f32 %v882_v63, %v282_v9 }
 0x7d8   :  { %v1032_v11 = vpack.c.bf16 %v284_v10, %v284_v10 }
 0x7da   :  { %297 = vrot.lane.b32.xlu0 %v1032_v11, %s928_s24 }
 0x84c   :  { %v298_v12 = vpop.permute.xlu0 %297 }
 0x84d   :  { %819 = vmatmul.mubr.msk.bf16.vlgmr.msra.gmra.mrb[4].mxu1 %vm23_vm1, %v298_v12 }
 0x84e   :  { %831 = vmatpush3.bf16.msra.mxu1 %v959_v1  ;;  %834 = vmatprep.mubr.msk.bf16.mxu1 %vm926_vm0, %v925_v0 }
 0x84f   :  { %832 = vmatprep.subr.bf16.mxu1 %v925_v0 }
 0x852   :  { %833 = vmatpush3.bf16.msra.mxu1 %v970_v2 }
 0x853   :  { %846 = vmatprep.subr.bf16.mxu1 %v925_v0 }
 0x920   :  { %v336_v15 = vpop.f32.mrb[4].mxu1 }
 0x921   :  { %v342_v16 = vadd.f32 %v336_v15, %v296_v14  ;;  %v820_v17 = vpop.f32.mrb[5].mxu1 }
 0x922   :  { %v339_v18 = vpop.f32.mrb[6].mxu1  ;;  %v542_v17 = vunpack.c.h.bf16 %v743_v58 }
 0x923   :  { %885 = vtanh.f32 %v342_v16  ;;  %v821_v19 = vpop.f32.mrb[7].mxu1  ;;  %v735_v21 = vmul.f32 -1.442695, %v342_v16 }
 0x925   :  { %887 = vpow2.f32 %v735_v21 }
 0x92d   :  { %v886_v20 = vpop.eup %885 }
 0x92e   :  { %352 = vrot.lane.b32.xlu1 %v886_v20, %s927_s23 }
 0x92f   :  { %v888_v22 = vpop.eup %887 }
 0x930   :  { %v346_v23 = vadd.f32 1.0, %v888_v22 }
 0x932   :  { %889 = vrcp.f32 %v346_v23 }
 0x93c   :  { %v890_v24 = vpop.eup %889 }
 0x93d   :  { %v350_v27 = vmul.f32 %v890_v24, %v278_v7 }
 0x9a0   :  { %v353_v25 = vpop.permute.xlu1 %352 }
 0x9a1   :  { %v355_v26 = vmul.f32 %v890_v24, %v353_v25 }
 0x9a3   :  { %357 = vrot.lane.b32.xlu0 %v355_v26, %s928_s24 }
 0xa15   :  { %v358_v28 = vpop.permute.xlu0 %357 }
 0xa16   :  { %v360_v30 = vadd.f32 %v358_v28, %v350_v27 }
 0xa18   :  { %891 = vtanh.f32 %v360_v30 }
 0xa22   :  { %v892_v31 = vpop.eup %891 }
 0xa23   :  { %363 = vrot.lane.b32.xlu1 %v892_v31, %s927_s23 }
 0xa95   :  { %v364_v32 = vpop.permute.xlu1 %363 }
 0xa96   :  { %v366_v33 = vmul.f32 %v890_v24, %v364_v32 }
 0xa98   :  { %v1049_v34 = vpack.c.bf16 %v366_v33, %v366_v33 }
 0xa9a   :  { %379 = vrot.lane.b32.xlu0 %v1049_v34, %s928_s24 }
 0xb0c   :  { %v380_v35 = vpop.permute.xlu0 %379 }
 0xb0d   :  { %827 = vmatmul.mubr.msk.bf16.vlgmr.msra.gmra.mrb[8].mxu0 %vm23_vm1, %v380_v35 }
 0xb0e   :  { %839 = vmatpush3.bf16.msra.mxu0 %v959_v1  ;;  %842 = vmatprep.mubr.msk.bf16.mxu0 %vm926_vm0, %v925_v0 }
 0xb0f   :  { %840 = vmatprep.subr.bf16.mxu0 %v925_v0 }
 0xb12   :  { %841 = vmatpush3.bf16.msra.mxu0 %v970_v2 }
 0xbe0   :  { %v418_v37 = vpop.f32.mrb[8].mxu0 }
 0xbe1   :  { %v424_v38 = vadd.f32 %v418_v37, %v378_v36  ;;  %v828_v39 = vpop.f32.mrb[9].mxu0 }
 0xbe2   :  { %v421_v40 = vpop.f32.mrb[10].mxu0 }
 0xbe3   :  { %893 = vtanh.f32 %v424_v38  ;;  %v829_v41 = vpop.f32.mrb[11].mxu0  ;;  %v740_v43 = vmul.f32 -1.442695, %v424_v38  ;;  %v753_v40 = vld [vmem:[%s1146_s0 + $0x1c] sm:$0xf] }
 0xbe4   :  { %v624_v41 = vunpack.c.l.bf16 %v753_v40 }
 0xbe5   :  { %895 = vpow2.f32 %v740_v43 }
 0xbed   :  { %v894_v42 = vpop.eup %893 }
 0xbee   :  { %434 = vrot.lane.b32.xlu1 %v894_v42, %s927_s23 }
 0xbef   :  { %v896_v44 = vpop.eup %895 }
 0xbf0   :  { %v428_v45 = vadd.f32 1.0, %v896_v44 }
 0xbf2   :  { %897 = vrcp.f32 %v428_v45 }
 0xbfc   :  { %v898_v46 = vpop.eup %897 }
 0xbfd   :  { %v432_v49 = vmul.f32 %v898_v46, %v360_v30 }
 0xc60   :  { %v435_v47 = vpop.permute.xlu1 %434 }
 0xc61   :  { %v437_v48 = vmul.f32 %v898_v46, %v435_v47 }
 0xc63   :  { %439 = vrot.lane.b32.xlu0 %v437_v48, %s928_s24 }
 0xcd5   :  { %v440_v50 = vpop.permute.xlu0 %439 }
 0xcd6   :  { %v442_v52 = vadd.f32 %v440_v50, %v432_v49 }
 0xcd8   :  { %899 = vtanh.f32 %v442_v52 }
 0xce2   :  { %v900_v53 = vpop.eup %899 }
 0xce3   :  { %445 = vrot.lane.b32.xlu1 %v900_v53, %s927_s23 }
 0xd55   :  { %v446_v54 = vpop.permute.xlu1 %445 }
 0xd56   :  { %v448_v55 = vmul.f32 %v898_v46, %v446_v54 }
 0xd58   :  { %v1062_v56 = vpack.c.bf16 %v448_v55, %v448_v55 }
 0xd5a   :  { %461 = vrot.lane.b32.xlu0 %v1062_v56, %s928_s24 }
 0xdcc   :  { %v462_v57 = vpop.permute.xlu0 %461 }
 0xdcd   :  { %835 = vmatmul.mubr.msk.bf16.vlgmr.msra.gmra.mrb[8].mxu1 %vm23_vm1, %v462_v57 }
 0xdce   :  { %847 = vmatpush3.bf16.msra.mxu1 %v959_v1  ;;  %850 = vmatprep.mubr.msk.bf16.mxu1 %vm926_vm0, %v925_v0 }
 0xdcf   :  { %848 = vmatprep.subr.bf16.mxu1 %v925_v0 }
 0xdd2   :  { %849 = vmatpush3.bf16.msra.mxu1 %v970_v2 }
 0xea0   :  { %v500_v60 = vpop.f32.mrb[8].mxu1 }
 0xea1   :  { %v506_v61 = vadd.f32 %v500_v60, %v460_v59  ;;  %v836_v62 = vpop.f32.mrb[9].mxu1 }
 0xea2   :  { %v503_v63 = vpop.f32.mrb[10].mxu1 }
 0xea3   :  { %901 = vtanh.f32 %v506_v61  ;;  %v837_v3 = vpop.f32.mrb[11].mxu1  ;;  %v745_v1 = vmul.f32 -1.442695, %v506_v61 }
 0xea5   :  { %903 = vpow2.f32 %v745_v1 }
 0xead   :  { %v902_v4 = vpop.eup %901 }
 0xeae   :  { %516 = vrot.lane.b32.xlu1 %v902_v4, %s927_s23 }
 0xeaf   :  { %v904_v5 = vpop.eup %903 }
 0xeb0   :  { %v510_v0 = vadd.f32 1.0, %v904_v5 }
 0xeb2   :  { %905 = vrcp.f32 %v510_v0 }
 0xebc   :  { %v906_v2 = vpop.eup %905 }
 0xebd   :  { %v514_v8 = vmul.f32 %v906_v2, %v442_v52 }
 0xf20   :  { %v517_v6 = vpop.permute.xlu1 %516 }
 0xf21   :  { %v519_v7 = vmul.f32 %v906_v2, %v517_v6 }
 0xf23   :  { %521 = vrot.lane.b32.xlu0 %v519_v7, %s928_s24 }
 0xf95   :  { %v522_v9 = vpop.permute.xlu0 %521 }
 0xf96   :  { %v524_v10 = vadd.f32 %v522_v9, %v514_v8 }
 0xf98   :  { %907 = vtanh.f32 %v524_v10 }
 0xfa2   :  { %v908_v12 = vpop.eup %907 }
 0xfa3   :  { %527 = vrot.lane.b32.xlu1 %v908_v12, %s927_s23 }
0x1015   :  { %v528_v13 = vpop.permute.xlu1 %527 }
0x1016   :  { %v530_v14 = vmul.f32 %v906_v2, %v528_v13 }
0x1018   :  { %v1078_v15 = vpack.c.bf16 %v530_v14, %v530_v14 }
0x101a   :  { %543 = vrot.lane.b32.xlu0 %v1078_v15, %s928_s24 }
0x108c   :  { %v544_v16 = vpop.permute.xlu0 %543 }
0x108d   :  { %843 = vmatmul.mubr.msk.bf16.vlgmr.msra.gmra.mrb[12].mxu0 %vm23_vm1, %v544_v16 }
0x1160   :  { %v582_v18 = vpop.f32.mrb[12].mxu0 }
0x1161   :  { %v588_v19 = vadd.f32 %v582_v18, %v542_v17  ;;  %v844_v20 = vpop.f32.mrb[13].mxu0 }
0x1162   :  { %v585_v21 = vpop.f32.mrb[14].mxu0 }
0x1163   :  { %909 = vtanh.f32 %v588_v19  ;;  %v845_v22 = vpop.f32.mrb[15].mxu0  ;;  %v750_v24 = vmul.f32 -1.442695, %v588_v19 }
0x1165   :  { %911 = vpow2.f32 %v750_v24 }
0x116d   :  { %v910_v23 = vpop.eup %909 }
0x116e   :  { %598 = vrot.lane.b32.xlu1 %v910_v23, %s927_s23 }
0x116f   :  { %v912_v25 = vpop.eup %911 }
0x1170   :  { %v592_v26 = vadd.f32 1.0, %v912_v25 }
0x1172   :  { %913 = vrcp.f32 %v592_v26 }
0x117c   :  { %v914_v27 = vpop.eup %913 }
0x117d   :  { %v596_v31 = vmul.f32 %v914_v27, %v524_v10 }
0x11e0   :  { %v599_v28 = vpop.permute.xlu1 %598 }
0x11e1   :  { %v601_v30 = vmul.f32 %v914_v27, %v599_v28 }
0x11e3   :  { %603 = vrot.lane.b32.xlu0 %v601_v30, %s928_s24 }
0x1255   :  { %v604_v32 = vpop.permute.xlu0 %603 }
0x1256   :  { %v606_v33 = vadd.f32 %v604_v32, %v596_v31 }
0x1258   :  { %915 = vtanh.f32 %v606_v33 }
0x1262   :  { %v916_v35 = vpop.eup %915 }
0x1263   :  { %609 = vrot.lane.b32.xlu1 %v916_v35, %s927_s23 }
0x12d5   :  { %v610_v36 = vpop.permute.xlu1 %609 }
0x12d6   :  { %v612_v37 = vmul.f32 %v914_v27, %v610_v36 }
0x12d8   :  { %v613_v38 = vpack.c.bf16 %v612_v37, %v612_v37 }
0x12da   :  { %625 = vrot.lane.b32.xlu0 %v613_v38, %s928_s24 }
0x134c   :  { %v626_v39 = vpop.permute.xlu0 %625 }
0x134d   :  { %851 = vmatmul.mubr.msk.bf16.vlgmr.msra.gmra.mrb[12].mxu1 %vm23_vm1, %v626_v39 }
0x1420   :  { %v664_v42 = vpop.f32.mrb[12].mxu1 }
0x1421   :  { %v670_v43 = vadd.f32 %v664_v42, %v624_v41  ;;  %v852_v44 = vpop.f32.mrb[13].mxu1 }
0x1422   :  { %v667_v45 = vpop.f32.mrb[14].mxu1 }
0x1423   :  { %917 = vtanh.f32 %v670_v43  ;;  %v853_v46 = vpop.f32.mrb[15].mxu1  ;;  %v755_v48 = vmul.f32 -1.442695, %v670_v43 }
0x1425   :  { %919 = vpow2.f32 %v755_v48 }
0x142d   :  { %v918_v47 = vpop.eup %917 }
0x142e   :  { %680 = vrot.lane.b32.xlu1 %v918_v47, %s927_s23 }
0x142f   :  { %v920_v49 = vpop.eup %919 }
0x1430   :  { %v674_v50 = vadd.f32 1.0, %v920_v49 }
0x1432   :  { %921 = vrcp.f32 %v674_v50 }
0x143c   :  { %v922_v52 = vpop.eup %921 }
0x143d   :  { %v678_v55 = vmul.f32 %v922_v52, %v606_v33 }
0x14a0   :  { %v681_v53 = vpop.permute.xlu1 %680 }
0x14a1   :  { %v683_v54 = vmul.f32 %v922_v52, %v681_v53 }
0x14a3   :  { %685 = vrot.lane.b32.xlu0 %v683_v54, %s928_s24 }
0x14a7   :  { %125 = vrot.lane.b32.xlu0 %v1001_v29, %s928_s24 }
0x14ab   :  { %289 = vrot.lane.b32.xlu0 %v1032_v11, %s928_s24 }
0x14af   :  { %453 = vrot.lane.b32.xlu0 %v1062_v56, %s928_s24 }
0x14b3   :  { %617 = vrot.lane.b32.xlu0 %v613_v38, %s928_s24 }
0x1515   :  { %v686_v57 = vpop.permute.xlu0 %685 }
0x1516   :  { %v688_v58 = vadd.f32 %v686_v57, %v678_v55 }
0x1518   :  { %923 = vtanh.f32 %v688_v58 }
0x1519   :  { %v126_v59 = vpop.permute.xlu0 %125 }
0x151a   :  { %129 = vst.msk [vmem:[%s1147_s4] sm:$0xf] %vm128_vm2, %v126_v59 }
0x151d   :  { %v290_v29 = vpop.permute.xlu0 %289 }
0x151e   :  { %732 = vst.msk [vmem:[%s1147_s4 + $0x8] sm:$0xf] %vm128_vm2, %v290_v29 }
0x1521   :  { %v454_v11 = vpop.permute.xlu0 %453 }
0x1522   :  { %v924_v56 = vpop.eup %923  ;;  %742 = vst.msk [vmem:[%s1147_s4 + $0x10] sm:$0xf] %vm128_vm2, %v454_v11 }
0x1523   :  { %691 = vrot.lane.b32.xlu1 %v924_v56, %s927_s23 }
0x1525   :  { %v618_v60 = vpop.permute.xlu0 %617 }
0x1526   :  { %752 = vst.msk [vmem:[%s1147_s4 + $0x18] sm:$0xf] %vm128_vm2, %v618_v60 }
0x1527   :  { %207 = vrot.lane.b32.xlu1 %v1018_v51, %s928_s24 }
0x152b   :  { %371 = vrot.lane.b32.xlu1 %v1049_v34, %s928_s24 }
0x152f   :  { %535 = vrot.lane.b32.xlu1 %v1078_v15, %s928_s24 }
0x1595   :  { %v692_v61 = vpop.permute.xlu1 %691 }
0x1596   :  { %v694_v62 = vmul.f32 %v922_v52, %v692_v61 }
0x1598   :  { %v765_v63 = vpack.c.bf16 %v694_v62, %v694_v62  ;;  %705 = vrot.lane.b32.xlu0 %v694_v62, %s928_s24 }
0x1599   :  { %v208_v3 = vpop.permute.xlu1 %207 }
0x159a   :  { %727 = vst.msk [vmem:[%s1147_s4 + $0x4] sm:$0xf] %vm128_vm2, %v208_v3  ;;  %699 = vrot.lane.b32.xlu1 %v765_v63, %s928_s24 }
0x159d   :  { %v372_v51 = vpop.permute.xlu1 %371 }
0x159e   :  { %737 = vst.msk [vmem:[%s1147_s4 + $0xc] sm:$0xf] %vm128_vm2, %v372_v51  ;;  %710 = vrot.lane.b32.xlu1 %v688_v58, %s929_s17 }
0x15a1   :  { %v536_v34 = vpop.permute.xlu1 %535 }
0x15a2   :  { %747 = vst.msk [vmem:[%s1147_s4 + $0x14] sm:$0xf] %vm128_vm2, %v536_v34 }
0x160a   :  { %v706_v4 = vpop.permute.xlu0 %705 }
0x160b   :  { %708 = vst.msk [vmem:[#allocation2] sm:$0xff] %vm23_vm1, %v706_v4 }
0x160c   :  { %v700_v1 = vpop.permute.xlu1 %699 }
0x160d   :  { %757 = vst.msk [vmem:[%s1147_s4 + $0x1c] sm:$0xf] %vm128_vm2, %v700_v1 }
0x1610   :  { %v711_v5 = vpop.permute.xlu1 %710 }
0x1611   :  { %713 = vst.msk [vmem:[#allocation3] sm:$0xff] %vm23_vm1, %v711_v5 }

</bundles_post_ra>
